<compile_context>
chip_gen: v6e
topology: v6e:2x2x1
jax: 0.10.0
libtpu: 0.0.40
codegen_flags: <defaults>
</compile_context>

<pallas_src>
import math

import jax
import jax.numpy as jnp
from jax.experimental import pallas as pl
from jax.experimental.pallas import tpu as pltpu

# ----------------------------- config ---------------------------------------
B = 2            # batch
T = 8            # trial_length
N = 32           # num_neurons
D = N            # d_model (EMBED_DIM == 0, LINEAR_EMBEDDER)
NUM_HEADS = 2
HEAD_DIM = D // NUM_HEADS
FFN = 64         # HIDDEN_SIZE
NUM_LAYERS = 2
LN_EPS = 1e-5
UNMASKED_LABEL = -100.0
R = B * T        # flattened rows (batch-major: row = b*T + t)
LANE = 128       # lane-dense output width
NEG_INF = -1e30  # additive mask value for cross-trial attention entries

# layer-slab row indices (one (8,128) slab per layer)
_B_QKV, _B_O, _LN1_G, _LN1_B, _B1, _B2, _LN2_G, _LN2_B = range(8)
# global-slab row indices
_LNF_G, _LNF_B, _B_DEC = range(3)

VSPEC = pl.BlockSpec(memory_space=pltpu.MemorySpace.VMEM)


# ----------------------------- kernel ----------------------------------------
def _layer_norm(x, gamma, beta, eps=LN_EPS):
    mu = jnp.mean(x, axis=-1, keepdims=True)
    xc = x - mu
    var = jnp.mean(xc * xc, axis=-1, keepdims=True)
    return xc * jax.lax.rsqrt(var + eps) * gamma + beta


def fused_ndt_kernel(
    x_ref,        # (R, N)       spikes, batch-major flatten
    pe_ref,       # (R, D)       tiled PE + scaled embedder bias
    bias_ref,     # (R, R)       block-diag additive attention mask
    w_emb_ref,    # (N, D)       embedder weight (pre-scaled by sqrt(D))
    w_qkv_ref,    # (L, D, 3D)   packed in_proj (Q cols pre-scaled 1/sqrt(hd))
    w_o_ref,      # (L, D, D)    out_proj
    w1_ref,       # (L, D, FFN)
    w2_ref,       # (L, FFN, D)
    w_dec_ref,    # (D, LANE)    decoder weight zero-padded to 128 lanes
    lslab_ref,    # (L, 8, 128)  per-layer small params
    gslab_ref,    # (8, 128)     global small params
    tgt_ref,      # (R, LANE)    mask_labels padded with UNMASKED_LABEL
    pred_ref,     # (R, LANE)    output: log rates (lanes >= N are zero)
    loss_ref,     # (1, 1)       output: masked-mean Poisson NLL
):
    # ---------------- embedding (sqrt(D) scale folded in) + positional enc.
    h = jnp.dot(x_ref[...], w_emb_ref[...],
                preferred_element_type=jnp.float32) + pe_ref[...]     # (R, D)
    bias = bias_ref[...]                                              # (R, R)

    # ---------------- transformer encoder layers (post-norm, full context)
    for l in range(NUM_LAYERS):
        x = h                                                         # (R, D)

        # packed QKV projection: one (R,D)x(D,3D) matmul per layer
        b_qkv = lslab_ref[l, _B_QKV:_B_QKV + 1, :3 * D]               # (1, 3D)
        qkv = jnp.dot(x, w_qkv_ref[l],
                      preferred_element_type=jnp.float32) + b_qkv     # (R, 3D)

        heads = []
        for hh in range(NUM_HEADS):
            q = qkv[:, hh * HEAD_DIM:(hh + 1) * HEAD_DIM]             # (R, hd)
            k = qkv[:, D + hh * HEAD_DIM:D + (hh + 1) * HEAD_DIM]
            v = qkv[:, 2 * D + hh * HEAD_DIM:2 * D + (hh + 1) * HEAD_DIM]
            # block-diagonal scores over the flat row axis (no reshapes)
            s = jax.lax.dot_general(
                q, k, (((1,), (1,)), ((), ())),
                preferred_element_type=jnp.float32) + bias            # (R, R)
            s = s - jnp.max(s, axis=-1, keepdims=True)
            p = jnp.exp(s)
            p = p / jnp.sum(p, axis=-1, keepdims=True)                # exact
            heads.append(jnp.dot(p, v,
                                 preferred_element_type=jnp.float32))  # (R,hd)

        # concat heads, single out-proj matmul
        o_all = jnp.concatenate(heads, axis=-1)                       # (R, D)
        attn = jnp.dot(o_all, w_o_ref[l],
                       preferred_element_type=jnp.float32) \
            + lslab_ref[l, _B_O:_B_O + 1, :D]

        # residual + LayerNorm1
        y = _layer_norm(x + attn,
                        lslab_ref[l, _LN1_G:_LN1_G + 1, :D],
                        lslab_ref[l, _LN1_B:_LN1_B + 1, :D])

        # feed-forward (ReLU)
        hid = jnp.maximum(
            jnp.dot(y, w1_ref[l], preferred_element_type=jnp.float32)
            + lslab_ref[l, _B1:_B1 + 1, :FFN], 0.0)
        ff = jnp.dot(hid, w2_ref[l], preferred_element_type=jnp.float32) \
            + lslab_ref[l, _B2:_B2 + 1, :D]

        # residual + LayerNorm2
        h = _layer_norm(y + ff,
                        lslab_ref[l, _LN2_G:_LN2_G + 1, :D],
                        lslab_ref[l, _LN2_B:_LN2_B + 1, :D])

    # ---------------- final LayerNorm + decoder (lane-dense) + Poisson NLL
    z = _layer_norm(h, gslab_ref[_LNF_G:_LNF_G + 1, :D],
                    gslab_ref[_LNF_B:_LNF_B + 1, :D])
    pred = jnp.dot(z, w_dec_ref[...], preferred_element_type=jnp.float32) \
        + gslab_ref[_B_DEC:_B_DEC + 1, :]                             # (R, 128)
    pred_ref[...] = pred                                              # full-lane store

    tgt = tgt_ref[...]                                                # (R, 128)
    # PoissonNLLLoss(log_input=True, full=False, reduction='none')
    nll = jnp.exp(pred) - tgt * pred
    valid = tgt != UNMASKED_LABEL      # padded lanes carry UNMASKED_LABEL
    lsum = jnp.sum(jnp.sum(jnp.where(valid, nll, 0.0), axis=1, keepdims=True),
                   axis=0, keepdims=True)                             # (1, 1)
    cnt = jnp.sum(jnp.sum(valid.astype(jnp.float32), axis=1, keepdims=True),
                  axis=0, keepdims=True)                              # (1, 1)
    # NOTE: like the PyTorch reference, an all-unmasked batch yields NaN here.
    loss_ref[...] = lsum / cnt


# ----------------------------- parameters ------------------------------------
def init_params(key):
    """'PyTorch-like' parameters (right-multiply form of each Linear)."""
    params = {}
    keys = jax.random.split(key, 16)
    ki = iter(keys)

    def unif(k, shape, lo=-0.1, hi=0.1):
        return jax.random.uniform(k, shape, jnp.float32, lo, hi)

    params["w_emb"] = unif(next(ki), (N, D))        # Linear(N, D), right-mult
    params["b_emb"] = jnp.zeros((D,), jnp.float32)

    # sinusoidal positional encoding (T, D)
    pos = jnp.arange(T, dtype=jnp.float32)[:, None]
    div = jnp.exp(jnp.arange(0, D, 2, dtype=jnp.float32)
                  * (-math.log(10000.0) / D))
    pe = jnp.zeros((T, D), jnp.float32)
    pe = pe.at[:, 0::2].set(jnp.sin(pos * div))
    pe = pe.at[:, 1::2].set(jnp.cos(pos * div))
    params["pe"] = pe

    layers = []
    for _ in range(NUM_LAYERS):
        layers.append({
            "w_in": unif(next(ki), (D, 3 * D)),     # packed q|k|v (right-mult)
            "b_in": jnp.zeros((3 * D,), jnp.float32),
            "w_o": unif(next(ki), (D, D)),          # out_proj (right-mult)
            "b_o": jnp.zeros((D,), jnp.float32),
            "ln1_g": jnp.ones((D,), jnp.float32),
            "ln1_b": jnp.zeros((D,), jnp.float32),
            "w1": unif(next(ki), (D, FFN)),
            "b1": jnp.zeros((FFN,), jnp.float32),
            "w2": unif(next(ki), (FFN, D)),
            "b2": jnp.zeros((D,), jnp.float32),
            "ln2_g": jnp.ones((D,), jnp.float32),
            "ln2_b": jnp.zeros((D,), jnp.float32),
        })
    params["layers"] = layers

    params["lnf_g"] = jnp.ones((D,), jnp.float32)
    params["lnf_b"] = jnp.zeros((D,), jnp.float32)

    # decoder (LOSS.TYPE='poisson', DECODER.LAYERS=1, LOGRATE=True)
    params["w_dec"] = unif(next(ki), (D, N))        # init_weights()
    params["b_dec"] = jnp.zeros((N,), jnp.float32)
    return params


def prepare_params(params):
    """Fold scales, pack small params into slabs, stack layer weights.

    NOTE (checkpoint loading): w_in / w_o / w1 / w2 / w_dec are the
    right-multiply transposes of PyTorch's weight matrices.
    """
    scale = math.sqrt(D)
    inv_sqrt_hd = 1.0 / math.sqrt(HEAD_DIM)

    def pad_row(v, value=0.0):
        v = jnp.asarray(v, jnp.float32).reshape(1, -1)
        return jnp.pad(v, ((0, 0), (0, LANE - v.shape[1])),
                       constant_values=value)

    # PE tiled to (R, D) with the scaled embedder bias folded in.
    pe_plus = jnp.tile(params["pe"], (B, 1)) + \
        (params["b_emb"] * scale)[None, :]

    # block-diagonal additive attention mask: 0 within a trial, -inf across.
    bidx = jnp.arange(R, dtype=jnp.int32) // T
    attn_bias = jnp.where(bidx[:, None] == bidx[None, :],
                          0.0, NEG_INF).astype(jnp.float32)

    w_qkv, w_o, w1, w2, lslab = [], [], [], [], []
    for lw in params["layers"]:
        # fold 1/sqrt(head_dim) into the Q columns of the packed in_proj
        w_qkv.append(lw["w_in"].at[:, :D].multiply(inv_sqrt_hd))
        b_qkv = lw["b_in"].at[:D].multiply(inv_sqrt_hd)
        w_o.append(lw["w_o"])
        w1.append(lw["w1"])
        w2.append(lw["w2"])
        lslab.append(jnp.concatenate([
            pad_row(b_qkv), pad_row(lw["b_o"]),
            pad_row(lw["ln1_g"]), pad_row(lw["ln1_b"]),
            pad_row(lw["b1"]), pad_row(lw["b2"]),
            pad_row(lw["ln2_g"]), pad_row(lw["ln2_b"]),
        ], axis=0))                                    # (8, 128)

    gslab = jnp.concatenate([
        pad_row(params["lnf_g"]), pad_row(params["lnf_b"]),
        pad_row(params["b_dec"]),
        jnp.zeros((5, LANE), jnp.float32),
    ], axis=0)                                         # (8, 128)

    return {
        "pe_plus": pe_plus,                            # (R, D)
        "attn_bias": attn_bias,                        # (R, R)
        "w_emb": params["w_emb"] * scale,              # (N, D)
        "w_qkv": jnp.stack(w_qkv),                     # (L, D, 3D)
        "w_o": jnp.stack(w_o),                         # (L, D, D)
        "w1": jnp.stack(w1),                           # (L, D, FFN)
        "w2": jnp.stack(w2),                           # (L, FFN, D)
        "w_dec": jnp.pad(params["w_dec"],
                         ((0, 0), (0, LANE - N))),     # (D, 128)
        "lslab": jnp.stack(lslab),                     # (L, 8, 128)
        "gslab": gslab,                                # (8, 128)
    }


def _cost_estimate(bytes_accessed):
    per_layer = (2 * R * D * 3 * D                      # packed QKV proj
                 + NUM_HEADS * 2 * (2 * R * R * HEAD_DIM)  # scores + context
                 + 2 * R * D * D                        # out proj
                 + 2 * R * D * FFN + 2 * R * FFN * D)   # FFN
    flops = 2 * R * N * D + NUM_LAYERS * per_layer + 2 * R * D * LANE
    transcendentals = (NUM_LAYERS * NUM_HEADS * R * R   # softmax exp
                       + (2 * NUM_LAYERS + 1) * R       # LN rsqrt
                       + R * LANE)                      # loss exp
    return pl.CostEstimate(flops=flops, transcendentals=transcendentals,
                           bytes_accessed=bytes_accessed)


# ----------------------------- forward ---------------------------------------
@jax.jit
def neural_data_transformer_forward(kp, src, mask_labels):
    """src: (B, T, N) spikes; mask_labels: (B, T, N) float (-100 = unmasked).

    Returns (masked_loss[1], pred_rates (B, T, N), layer_outputs, layer_weights)
    matching the PyTorch module in eval mode.
    """
    x = src.astype(jnp.float32).reshape(R, N)            # batch-major flatten
    # pad targets to 128 lanes with UNMASKED_LABEL so padded lanes never
    # contribute to the masked Poisson NLL
    tgt = jnp.pad(mask_labels.astype(jnp.float32).reshape(R, N),
                  ((0, 0), (0, LANE - N)), constant_values=UNMASKED_LABEL)

    args = (x, kp["pe_plus"], kp["attn_bias"], kp["w_emb"], kp["w_qkv"],
            kp["w_o"], kp["w1"], kp["w2"], kp["w_dec"], kp["lslab"],
            kp["gslab"], tgt)

    bytes_accessed = 4 * (sum(int(a.size) for a in args) + R * LANE + 1)

    pred_pad, loss = pl.pallas_call(
        fused_ndt_kernel,
        out_shape=(jax.ShapeDtypeStruct((R, LANE), jnp.float32),
                   jax.ShapeDtypeStruct((1, 1), jnp.float32)),
        in_specs=[VSPEC] * len(args),
        out_specs=(VSPEC, VSPEC),
        cost_estimate=_cost_estimate(bytes_accessed),
    )(*args)

    pred_rates = pred_pad[:, :N].reshape(B, T, N)  # slice off padded lanes
    masked_loss = loss.reshape(1)                  # .mean().unsqueeze(0)

    layer_outputs = []      # return_outputs=False
    layer_weights = None    # return_weights=False
    return masked_loss, pred_rates, layer_outputs, layer_weights


# ----------------------------- main ------------------------------------------
if __name__ == "__main__":
    key = jax.random.PRNGKey(0)
    k_param, k_spk, k_mask = jax.random.split(key, 3)

    params = init_params(k_param)
    kernel_params = prepare_params(params)   # one-time weight prep (off hot path)

    # spikes (B, T, N) -- small integer counts as float
    spikes = jax.random.randint(k_spk, (B, T, N), 0, 5).astype(jnp.float32)

    # mask_labels: spike count where masked, UNMASKED_LABEL elsewhere
    masked = jax.random.bernoulli(k_mask, 0.25, (B, T, N))
    mask_labels = jnp.where(masked, spikes, UNMASKED_LABEL)
    mask_labels = mask_labels.at[0, 0, 0].set(spikes[0, 0, 0])  # >=1 masked elt

    loss, pred_rates, layer_outputs, layer_weights = \
        neural_data_transformer_forward(kernel_params, spikes, mask_labels)

    jax.block_until_ready(loss)
    jax.block_until_ready(pred_rates)
    assert loss.shape == (1,)
    assert pred_rates.shape == (B, T, N)
    assert bool(jnp.isfinite(loss[0]))
    print("KERNEL_OK")
</pallas_src>

<mosaic_0001>
module attributes {stable_mosaic.version = 11 : i64} {
  func.func @fused_ndt_kernel(%arg0: memref<16x32xf32, #tpu.memory_space<vmem>>, %arg1: memref<16x32xf32, #tpu.memory_space<vmem>>, %arg2: memref<16x16xf32, #tpu.memory_space<vmem>>, %arg3: memref<32x32xf32, #tpu.memory_space<vmem>>, %arg4: memref<2x32x96xf32, #tpu.memory_space<vmem>>, %arg5: memref<2x32x32xf32, #tpu.memory_space<vmem>>, %arg6: memref<2x32x64xf32, #tpu.memory_space<vmem>>, %arg7: memref<2x64x32xf32, #tpu.memory_space<vmem>>, %arg8: memref<32x128xf32, #tpu.memory_space<vmem>>, %arg9: memref<2x8x128xf32, #tpu.memory_space<vmem>>, %arg10: memref<8x128xf32, #tpu.memory_space<vmem>>, %arg11: memref<16x128xf32, #tpu.memory_space<vmem>>, %arg12: memref<16x128xf32, #tpu.memory_space<vmem>>, %arg13: memref<1x1xf32, #tpu.memory_space<vmem>>) attributes {dimension_semantics = [], scalar_prefetch = 0 : i64, scratch_operands = 0 : i64, tpu.core_type = #tpu.core_type<tc>} {
    %c0 = arith.constant 0 : index
    %c0_0 = arith.constant 0 : index
    %0 = vector.load %arg0[%c0, %c0_0] : memref<16x32xf32, #tpu.memory_space<vmem>>, vector<16x32xf32>
    %c0_1 = arith.constant 0 : index
    %c0_2 = arith.constant 0 : index
    %1 = vector.load %arg3[%c0_1, %c0_2] : memref<32x32xf32, #tpu.memory_space<vmem>>, vector<32x32xf32>
    %cst = arith.constant dense<0.000000e+00> : vector<16x32xf32>
    %2 = tpu.matmul %0, %1, %cst {dimension_numbers = #tpu.dot_dimension_numbers<[1], [0], [0], [1], [0, 0, 1, 1], [], []>} : vector<16x32xf32>, vector<32x32xf32>, vector<16x32xf32> -> vector<16x32xf32>
    %c0_3 = arith.constant 0 : index
    %c0_4 = arith.constant 0 : index
    %3 = vector.load %arg1[%c0_3, %c0_4] : memref<16x32xf32, #tpu.memory_space<vmem>>, vector<16x32xf32>
    %4 = arith.addf %2, %3 : vector<16x32xf32>
    %c0_5 = arith.constant 0 : index
    %c0_6 = arith.constant 0 : index
    %5 = vector.load %arg2[%c0_5, %c0_6] : memref<16x16xf32, #tpu.memory_space<vmem>>, vector<16x16xf32>
    %c0_7 = arith.constant 0 : index
    %c0_8 = arith.constant 0 : index
    %c0_9 = arith.constant 0 : index
    %6 = vector.load %arg9[%c0_7, %c0_8, %c0_9] : memref<2x8x128xf32, #tpu.memory_space<vmem>>, vector<1x1x96xf32>
    %7 = vector.shape_cast %6 : vector<1x1x96xf32> to vector<1x96xf32>
    %c0_10 = arith.constant 0 : index
    %c0_11 = arith.constant 0 : index
    %c0_12 = arith.constant 0 : index
    %8 = vector.load %arg4[%c0_10, %c0_11, %c0_12] : memref<2x32x96xf32, #tpu.memory_space<vmem>>, vector<1x32x96xf32>
    %9 = vector.shape_cast %8 : vector<1x32x96xf32> to vector<32x96xf32>
    %cst_13 = arith.constant dense<0.000000e+00> : vector<16x96xf32>
    %10 = tpu.matmul %4, %9, %cst_13 {dimension_numbers = #tpu.dot_dimension_numbers<[1], [0], [0], [1], [0, 0, 1, 1], [], []>} : vector<16x32xf32>, vector<32x96xf32>, vector<16x96xf32> -> vector<16x96xf32>
    %11 = vector.broadcast %7 : vector<1x96xf32> to vector<16x96xf32>
    %12 = arith.addf %10, %11 : vector<16x96xf32>
    %13 = vector.extract_strided_slice %12 {offsets = [0, 0], sizes = [16, 16], strides = [1, 1]} : vector<16x96xf32> to vector<16x16xf32>
    %14 = vector.extract_strided_slice %12 {offsets = [0, 32], sizes = [16, 16], strides = [1, 1]} : vector<16x96xf32> to vector<16x16xf32>
    %15 = vector.extract_strided_slice %12 {offsets = [0, 64], sizes = [16, 16], strides = [1, 1]} : vector<16x96xf32> to vector<16x16xf32>
    %cst_14 = arith.constant dense<0.000000e+00> : vector<16x16xf32>
    %16 = tpu.matmul %13, %14, %cst_14 {dimension_numbers = #tpu.dot_dimension_numbers<[1], [1], [0], [0], [0, 0, 1, 0], [], []>} : vector<16x16xf32>, vector<16x16xf32>, vector<16x16xf32> -> vector<16x16xf32>
    %17 = arith.addf %16, %5 : vector<16x16xf32>
    %cst_15 = arith.constant dense<0xFF800000> : vector<16xf32>
    %18 = vector.multi_reduction <maximumf>, %17, %cst_15 [1] : vector<16x16xf32> to vector<16xf32>
    %19 = vector.shape_cast %18 : vector<16xf32> to vector<16x1xf32>
    %20 = vector.broadcast %19 : vector<16x1xf32> to vector<16x16xf32>
    %21 = arith.subf %17, %20 : vector<16x16xf32>
    %22 = math.exp %21 : vector<16x16xf32>
    %cst_16 = arith.constant dense<0.000000e+00> : vector<16xf32>
    %23 = vector.multi_reduction <add>, %22, %cst_16 [1] : vector<16x16xf32> to vector<16xf32>
    %24 = vector.shape_cast %23 : vector<16xf32> to vector<16x1xf32>
    %25 = vector.broadcast %24 : vector<16x1xf32> to vector<16x16xf32>
    %26 = arith.divf %22, %25 : vector<16x16xf32>
    %cst_17 = arith.constant dense<0.000000e+00> : vector<16x16xf32>
    %27 = tpu.matmul %26, %15, %cst_17 {dimension_numbers = #tpu.dot_dimension_numbers<[1], [0], [0], [1], [0, 0, 1, 1], [], []>} : vector<16x16xf32>, vector<16x16xf32>, vector<16x16xf32> -> vector<16x16xf32>
    %28 = vector.extract_strided_slice %12 {offsets = [0, 16], sizes = [16, 16], strides = [1, 1]} : vector<16x96xf32> to vector<16x16xf32>
    %29 = vector.extract_strided_slice %12 {offsets = [0, 48], sizes = [16, 16], strides = [1, 1]} : vector<16x96xf32> to vector<16x16xf32>
    %30 = vector.extract_strided_slice %12 {offsets = [0, 80], sizes = [16, 16], strides = [1, 1]} : vector<16x96xf32> to vector<16x16xf32>
    %cst_18 = arith.constant dense<0.000000e+00> : vector<16x16xf32>
    %31 = tpu.matmul %28, %29, %cst_18 {dimension_numbers = #tpu.dot_dimension_numbers<[1], [1], [0], [0], [0, 0, 1, 0], [], []>} : vector<16x16xf32>, vector<16x16xf32>, vector<16x16xf32> -> vector<16x16xf32>
    %32 = arith.addf %31, %5 : vector<16x16xf32>
    %cst_19 = arith.constant dense<0xFF800000> : vector<16xf32>
    %33 = vector.multi_reduction <maximumf>, %32, %cst_19 [1] : vector<16x16xf32> to vector<16xf32>
    %34 = vector.shape_cast %33 : vector<16xf32> to vector<16x1xf32>
    %35 = vector.broadcast %34 : vector<16x1xf32> to vector<16x16xf32>
    %36 = arith.subf %32, %35 : vector<16x16xf32>
    %37 = math.exp %36 : vector<16x16xf32>
    %cst_20 = arith.constant dense<0.000000e+00> : vector<16xf32>
    %38 = vector.multi_reduction <add>, %37, %cst_20 [1] : vector<16x16xf32> to vector<16xf32>
    %39 = vector.shape_cast %38 : vector<16xf32> to vector<16x1xf32>
    %40 = vector.broadcast %39 : vector<16x1xf32> to vector<16x16xf32>
    %41 = arith.divf %37, %40 : vector<16x16xf32>
    %cst_21 = arith.constant dense<0.000000e+00> : vector<16x16xf32>
    %42 = tpu.matmul %41, %30, %cst_21 {dimension_numbers = #tpu.dot_dimension_numbers<[1], [0], [0], [1], [0, 0, 1, 1], [], []>} : vector<16x16xf32>, vector<16x16xf32>, vector<16x16xf32> -> vector<16x16xf32>
    %43 = tpu.concatenate %27, %42 in 1 : vector<16x16xf32>, vector<16x16xf32> -> vector<16x32xf32>
    %c0_22 = arith.constant 0 : index
    %c0_23 = arith.constant 0 : index
    %c0_24 = arith.constant 0 : index
    %44 = vector.load %arg5[%c0_22, %c0_23, %c0_24] : memref<2x32x32xf32, #tpu.memory_space<vmem>>, vector<1x32x32xf32>
    %45 = vector.shape_cast %44 : vector<1x32x32xf32> to vector<32x32xf32>
    %cst_25 = arith.constant dense<0.000000e+00> : vector<16x32xf32>
    %46 = tpu.matmul %43, %45, %cst_25 {dimension_numbers = #tpu.dot_dimension_numbers<[1], [0], [0], [1], [0, 0, 1, 1], [], []>} : vector<16x32xf32>, vector<32x32xf32>, vector<16x32xf32> -> vector<16x32xf32>
    %c0_26 = arith.constant 0 : index
    %c1 = arith.constant 1 : index
    %c0_27 = arith.constant 0 : index
    %47 = vector.load %arg9[%c0_26, %c1, %c0_27] : memref<2x8x128xf32, #tpu.memory_space<vmem>>, vector<1x1x32xf32>
    %48 = vector.shape_cast %47 : vector<1x1x32xf32> to vector<1x32xf32>
    %49 = vector.broadcast %48 : vector<1x32xf32> to vector<16x32xf32>
    %50 = arith.addf %46, %49 : vector<16x32xf32>
    %51 = arith.addf %4, %50 : vector<16x32xf32>
    %c0_28 = arith.constant 0 : index
    %c2 = arith.constant 2 : index
    %c0_29 = arith.constant 0 : index
    %52 = vector.load %arg9[%c0_28, %c2, %c0_29] : memref<2x8x128xf32, #tpu.memory_space<vmem>>, vector<1x1x32xf32>
    %53 = vector.shape_cast %52 : vector<1x1x32xf32> to vector<1x32xf32>
    %c0_30 = arith.constant 0 : index
    %c3 = arith.constant 3 : index
    %c0_31 = arith.constant 0 : index
    %54 = vector.load %arg9[%c0_30, %c3, %c0_31] : memref<2x8x128xf32, #tpu.memory_space<vmem>>, vector<1x1x32xf32>
    %55 = vector.shape_cast %54 : vector<1x1x32xf32> to vector<1x32xf32>
    %cst_32 = arith.constant dense<0.000000e+00> : vector<16xf32>
    %56 = vector.multi_reduction <add>, %51, %cst_32 [1] : vector<16x32xf32> to vector<16xf32>
    %57 = vector.shape_cast %56 : vector<16xf32> to vector<16x1xf32>
    %cst_33 = arith.constant 3.200000e+01 : f32
    %58 = vector.broadcast %cst_33 : f32 to vector<16x1xf32>
    %59 = arith.divf %57, %58 : vector<16x1xf32>
    %60 = vector.broadcast %59 : vector<16x1xf32> to vector<16x32xf32>
    %61 = arith.subf %51, %60 : vector<16x32xf32>
    %62 = arith.mulf %61, %61 : vector<16x32xf32>
    %cst_34 = arith.constant dense<0.000000e+00> : vector<16xf32>
    %63 = vector.multi_reduction <add>, %62, %cst_34 [1] : vector<16x32xf32> to vector<16xf32>
    %64 = vector.shape_cast %63 : vector<16xf32> to vector<16x1xf32>
    %cst_35 = arith.constant 3.200000e+01 : f32
    %65 = vector.broadcast %cst_35 : f32 to vector<16x1xf32>
    %66 = arith.divf %64, %65 : vector<16x1xf32>
    %cst_36 = arith.constant 9.99999974E-6 : f32
    %67 = vector.broadcast %cst_36 : f32 to vector<16x1xf32>
    %68 = arith.addf %66, %67 : vector<16x1xf32>
    %69 = math.rsqrt %68 : vector<16x1xf32>
    %70 = vector.broadcast %69 : vector<16x1xf32> to vector<16x32xf32>
    %71 = arith.mulf %61, %70 : vector<16x32xf32>
    %72 = vector.broadcast %53 : vector<1x32xf32> to vector<16x32xf32>
    %73 = arith.mulf %71, %72 : vector<16x32xf32>
    %74 = vector.broadcast %55 : vector<1x32xf32> to vector<16x32xf32>
    %75 = arith.addf %73, %74 : vector<16x32xf32>
    %c0_37 = arith.constant 0 : index
    %c0_38 = arith.constant 0 : index
    %c0_39 = arith.constant 0 : index
    %76 = vector.load %arg6[%c0_37, %c0_38, %c0_39] : memref<2x32x64xf32, #tpu.memory_space<vmem>>, vector<1x32x64xf32>
    %77 = vector.shape_cast %76 : vector<1x32x64xf32> to vector<32x64xf32>
    %cst_40 = arith.constant dense<0.000000e+00> : vector<16x64xf32>
    %78 = tpu.matmul %75, %77, %cst_40 {dimension_numbers = #tpu.dot_dimension_numbers<[1], [0], [0], [1], [0, 0, 1, 1], [], []>} : vector<16x32xf32>, vector<32x64xf32>, vector<16x64xf32> -> vector<16x64xf32>
    %c0_41 = arith.constant 0 : index
    %c4 = arith.constant 4 : index
    %c0_42 = arith.constant 0 : index
    %79 = vector.load %arg9[%c0_41, %c4, %c0_42] : memref<2x8x128xf32, #tpu.memory_space<vmem>>, vector<1x1x64xf32>
    %80 = vector.shape_cast %79 : vector<1x1x64xf32> to vector<1x64xf32>
    %81 = vector.broadcast %80 : vector<1x64xf32> to vector<16x64xf32>
    %82 = arith.addf %78, %81 : vector<16x64xf32>
    %cst_43 = arith.constant 0.000000e+00 : f32
    %83 = vector.broadcast %cst_43 : f32 to vector<16x64xf32>
    %84 = arith.maximumf %82, %83 : vector<16x64xf32>
    %c0_44 = arith.constant 0 : index
    %c0_45 = arith.constant 0 : index
    %c0_46 = arith.constant 0 : index
    %85 = vector.load %arg7[%c0_44, %c0_45, %c0_46] : memref<2x64x32xf32, #tpu.memory_space<vmem>>, vector<1x64x32xf32>
    %86 = vector.shape_cast %85 : vector<1x64x32xf32> to vector<64x32xf32>
    %cst_47 = arith.constant dense<0.000000e+00> : vector<16x32xf32>
    %87 = tpu.matmul %84, %86, %cst_47 {dimension_numbers = #tpu.dot_dimension_numbers<[1], [0], [0], [1], [0, 0, 1, 1], [], []>} : vector<16x64xf32>, vector<64x32xf32>, vector<16x32xf32> -> vector<16x32xf32>
    %c0_48 = arith.constant 0 : index
    %c5 = arith.constant 5 : index
    %c0_49 = arith.constant 0 : index
    %88 = vector.load %arg9[%c0_48, %c5, %c0_49] : memref<2x8x128xf32, #tpu.memory_space<vmem>>, vector<1x1x32xf32>
    %89 = vector.shape_cast %88 : vector<1x1x32xf32> to vector<1x32xf32>
    %90 = vector.broadcast %89 : vector<1x32xf32> to vector<16x32xf32>
    %91 = arith.addf %87, %90 : vector<16x32xf32>
    %92 = arith.addf %75, %91 : vector<16x32xf32>
    %c0_50 = arith.constant 0 : index
    %c6 = arith.constant 6 : index
    %c0_51 = arith.constant 0 : index
    %93 = vector.load %arg9[%c0_50, %c6, %c0_51] : memref<2x8x128xf32, #tpu.memory_space<vmem>>, vector<1x1x32xf32>
    %94 = vector.shape_cast %93 : vector<1x1x32xf32> to vector<1x32xf32>
    %c0_52 = arith.constant 0 : index
    %c7 = arith.constant 7 : index
    %c0_53 = arith.constant 0 : index
    %95 = vector.load %arg9[%c0_52, %c7, %c0_53] : memref<2x8x128xf32, #tpu.memory_space<vmem>>, vector<1x1x32xf32>
    %96 = vector.shape_cast %95 : vector<1x1x32xf32> to vector<1x32xf32>
    %cst_54 = arith.constant dense<0.000000e+00> : vector<16xf32>
    %97 = vector.multi_reduction <add>, %92, %cst_54 [1] : vector<16x32xf32> to vector<16xf32>
    %98 = vector.shape_cast %97 : vector<16xf32> to vector<16x1xf32>
    %cst_55 = arith.constant 3.200000e+01 : f32
    %99 = vector.broadcast %cst_55 : f32 to vector<16x1xf32>
    %100 = arith.divf %98, %99 : vector<16x1xf32>
    %101 = vector.broadcast %100 : vector<16x1xf32> to vector<16x32xf32>
    %102 = arith.subf %92, %101 : vector<16x32xf32>
    %103 = arith.mulf %102, %102 : vector<16x32xf32>
    %cst_56 = arith.constant dense<0.000000e+00> : vector<16xf32>
    %104 = vector.multi_reduction <add>, %103, %cst_56 [1] : vector<16x32xf32> to vector<16xf32>
    %105 = vector.shape_cast %104 : vector<16xf32> to vector<16x1xf32>
    %cst_57 = arith.constant 3.200000e+01 : f32
    %106 = vector.broadcast %cst_57 : f32 to vector<16x1xf32>
    %107 = arith.divf %105, %106 : vector<16x1xf32>
    %cst_58 = arith.constant 9.99999974E-6 : f32
    %108 = vector.broadcast %cst_58 : f32 to vector<16x1xf32>
    %109 = arith.addf %107, %108 : vector<16x1xf32>
    %110 = math.rsqrt %109 : vector<16x1xf32>
    %111 = vector.broadcast %110 : vector<16x1xf32> to vector<16x32xf32>
    %112 = arith.mulf %102, %111 : vector<16x32xf32>
    %113 = vector.broadcast %94 : vector<1x32xf32> to vector<16x32xf32>
    %114 = arith.mulf %112, %113 : vector<16x32xf32>
    %115 = vector.broadcast %96 : vector<1x32xf32> to vector<16x32xf32>
    %116 = arith.addf %114, %115 : vector<16x32xf32>
    %c1_59 = arith.constant 1 : index
    %c0_60 = arith.constant 0 : index
    %c0_61 = arith.constant 0 : index
    %117 = vector.load %arg9[%c1_59, %c0_60, %c0_61] : memref<2x8x128xf32, #tpu.memory_space<vmem>>, vector<1x1x96xf32>
    %118 = vector.shape_cast %117 : vector<1x1x96xf32> to vector<1x96xf32>
    %c1_62 = arith.constant 1 : index
    %c0_63 = arith.constant 0 : index
    %c0_64 = arith.constant 0 : index
    %119 = vector.load %arg4[%c1_62, %c0_63, %c0_64] : memref<2x32x96xf32, #tpu.memory_space<vmem>>, vector<1x32x96xf32>
    %120 = vector.shape_cast %119 : vector<1x32x96xf32> to vector<32x96xf32>
    %cst_65 = arith.constant dense<0.000000e+00> : vector<16x96xf32>
    %121 = tpu.matmul %116, %120, %cst_65 {dimension_numbers = #tpu.dot_dimension_numbers<[1], [0], [0], [1], [0, 0, 1, 1], [], []>} : vector<16x32xf32>, vector<32x96xf32>, vector<16x96xf32> -> vector<16x96xf32>
    %122 = vector.broadcast %118 : vector<1x96xf32> to vector<16x96xf32>
    %123 = arith.addf %121, %122 : vector<16x96xf32>
    %124 = vector.extract_strided_slice %123 {offsets = [0, 0], sizes = [16, 16], strides = [1, 1]} : vector<16x96xf32> to vector<16x16xf32>
    %125 = vector.extract_strided_slice %123 {offsets = [0, 32], sizes = [16, 16], strides = [1, 1]} : vector<16x96xf32> to vector<16x16xf32>
    %126 = vector.extract_strided_slice %123 {offsets = [0, 64], sizes = [16, 16], strides = [1, 1]} : vector<16x96xf32> to vector<16x16xf32>
    %cst_66 = arith.constant dense<0.000000e+00> : vector<16x16xf32>
    %127 = tpu.matmul %124, %125, %cst_66 {dimension_numbers = #tpu.dot_dimension_numbers<[1], [1], [0], [0], [0, 0, 1, 0], [], []>} : vector<16x16xf32>, vector<16x16xf32>, vector<16x16xf32> -> vector<16x16xf32>
    %128 = arith.addf %127, %5 : vector<16x16xf32>
    %cst_67 = arith.constant dense<0xFF800000> : vector<16xf32>
    %129 = vector.multi_reduction <maximumf>, %128, %cst_67 [1] : vector<16x16xf32> to vector<16xf32>
    %130 = vector.shape_cast %129 : vector<16xf32> to vector<16x1xf32>
    %131 = vector.broadcast %130 : vector<16x1xf32> to vector<16x16xf32>
    %132 = arith.subf %128, %131 : vector<16x16xf32>
    %133 = math.exp %132 : vector<16x16xf32>
    %cst_68 = arith.constant dense<0.000000e+00> : vector<16xf32>
    %134 = vector.multi_reduction <add>, %133, %cst_68 [1] : vector<16x16xf32> to vector<16xf32>
    %135 = vector.shape_cast %134 : vector<16xf32> to vector<16x1xf32>
    %136 = vector.broadcast %135 : vector<16x1xf32> to vector<16x16xf32>
    %137 = arith.divf %133, %136 : vector<16x16xf32>
    %cst_69 = arith.constant dense<0.000000e+00> : vector<16x16xf32>
    %138 = tpu.matmul %137, %126, %cst_69 {dimension_numbers = #tpu.dot_dimension_numbers<[1], [0], [0], [1], [0, 0, 1, 1], [], []>} : vector<16x16xf32>, vector<16x16xf32>, vector<16x16xf32> -> vector<16x16xf32>
    %139 = vector.extract_strided_slice %123 {offsets = [0, 16], sizes = [16, 16], strides = [1, 1]} : vector<16x96xf32> to vector<16x16xf32>
    %140 = vector.extract_strided_slice %123 {offsets = [0, 48], sizes = [16, 16], strides = [1, 1]} : vector<16x96xf32> to vector<16x16xf32>
    %141 = vector.extract_strided_slice %123 {offsets = [0, 80], sizes = [16, 16], strides = [1, 1]} : vector<16x96xf32> to vector<16x16xf32>
    %cst_70 = arith.constant dense<0.000000e+00> : vector<16x16xf32>
    %142 = tpu.matmul %139, %140, %cst_70 {dimension_numbers = #tpu.dot_dimension_numbers<[1], [1], [0], [0], [0, 0, 1, 0], [], []>} : vector<16x16xf32>, vector<16x16xf32>, vector<16x16xf32> -> vector<16x16xf32>
    %143 = arith.addf %142, %5 : vector<16x16xf32>
    %cst_71 = arith.constant dense<0xFF800000> : vector<16xf32>
    %144 = vector.multi_reduction <maximumf>, %143, %cst_71 [1] : vector<16x16xf32> to vector<16xf32>
    %145 = vector.shape_cast %144 : vector<16xf32> to vector<16x1xf32>
    %146 = vector.broadcast %145 : vector<16x1xf32> to vector<16x16xf32>
    %147 = arith.subf %143, %146 : vector<16x16xf32>
    %148 = math.exp %147 : vector<16x16xf32>
    %cst_72 = arith.constant dense<0.000000e+00> : vector<16xf32>
    %149 = vector.multi_reduction <add>, %148, %cst_72 [1] : vector<16x16xf32> to vector<16xf32>
    %150 = vector.shape_cast %149 : vector<16xf32> to vector<16x1xf32>
    %151 = vector.broadcast %150 : vector<16x1xf32> to vector<16x16xf32>
    %152 = arith.divf %148, %151 : vector<16x16xf32>
    %cst_73 = arith.constant dense<0.000000e+00> : vector<16x16xf32>
    %153 = tpu.matmul %152, %141, %cst_73 {dimension_numbers = #tpu.dot_dimension_numbers<[1], [0], [0], [1], [0, 0, 1, 1], [], []>} : vector<16x16xf32>, vector<16x16xf32>, vector<16x16xf32> -> vector<16x16xf32>
    %154 = tpu.concatenate %138, %153 in 1 : vector<16x16xf32>, vector<16x16xf32> -> vector<16x32xf32>
    %c1_74 = arith.constant 1 : index
    %c0_75 = arith.constant 0 : index
    %c0_76 = arith.constant 0 : index
    %155 = vector.load %arg5[%c1_74, %c0_75, %c0_76] : memref<2x32x32xf32, #tpu.memory_space<vmem>>, vector<1x32x32xf32>
    %156 = vector.shape_cast %155 : vector<1x32x32xf32> to vector<32x32xf32>
    %cst_77 = arith.constant dense<0.000000e+00> : vector<16x32xf32>
    %157 = tpu.matmul %154, %156, %cst_77 {dimension_numbers = #tpu.dot_dimension_numbers<[1], [0], [0], [1], [0, 0, 1, 1], [], []>} : vector<16x32xf32>, vector<32x32xf32>, vector<16x32xf32> -> vector<16x32xf32>
    %c1_78 = arith.constant 1 : index
    %c1_79 = arith.constant 1 : index
    %c0_80 = arith.constant 0 : index
    %158 = vector.load %arg9[%c1_78, %c1_79, %c0_80] : memref<2x8x128xf32, #tpu.memory_space<vmem>>, vector<1x1x32xf32>
    %159 = vector.shape_cast %158 : vector<1x1x32xf32> to vector<1x32xf32>
    %160 = vector.broadcast %159 : vector<1x32xf32> to vector<16x32xf32>
    %161 = arith.addf %157, %160 : vector<16x32xf32>
    %162 = arith.addf %116, %161 : vector<16x32xf32>
    %c1_81 = arith.constant 1 : index
    %c2_82 = arith.constant 2 : index
    %c0_83 = arith.constant 0 : index
    %163 = vector.load %arg9[%c1_81, %c2_82, %c0_83] : memref<2x8x128xf32, #tpu.memory_space<vmem>>, vector<1x1x32xf32>
    %164 = vector.shape_cast %163 : vector<1x1x32xf32> to vector<1x32xf32>
    %c1_84 = arith.constant 1 : index
    %c3_85 = arith.constant 3 : index
    %c0_86 = arith.constant 0 : index
    %165 = vector.load %arg9[%c1_84, %c3_85, %c0_86] : memref<2x8x128xf32, #tpu.memory_space<vmem>>, vector<1x1x32xf32>
    %166 = vector.shape_cast %165 : vector<1x1x32xf32> to vector<1x32xf32>
    %cst_87 = arith.constant dense<0.000000e+00> : vector<16xf32>
    %167 = vector.multi_reduction <add>, %162, %cst_87 [1] : vector<16x32xf32> to vector<16xf32>
    %168 = vector.shape_cast %167 : vector<16xf32> to vector<16x1xf32>
    %cst_88 = arith.constant 3.200000e+01 : f32
    %169 = vector.broadcast %cst_88 : f32 to vector<16x1xf32>
    %170 = arith.divf %168, %169 : vector<16x1xf32>
    %171 = vector.broadcast %170 : vector<16x1xf32> to vector<16x32xf32>
    %172 = arith.subf %162, %171 : vector<16x32xf32>
    %173 = arith.mulf %172, %172 : vector<16x32xf32>
    %cst_89 = arith.constant dense<0.000000e+00> : vector<16xf32>
    %174 = vector.multi_reduction <add>, %173, %cst_89 [1] : vector<16x32xf32> to vector<16xf32>
    %175 = vector.shape_cast %174 : vector<16xf32> to vector<16x1xf32>
    %cst_90 = arith.constant 3.200000e+01 : f32
    %176 = vector.broadcast %cst_90 : f32 to vector<16x1xf32>
    %177 = arith.divf %175, %176 : vector<16x1xf32>
    %cst_91 = arith.constant 9.99999974E-6 : f32
    %178 = vector.broadcast %cst_91 : f32 to vector<16x1xf32>
    %179 = arith.addf %177, %178 : vector<16x1xf32>
    %180 = math.rsqrt %179 : vector<16x1xf32>
    %181 = vector.broadcast %180 : vector<16x1xf32> to vector<16x32xf32>
    %182 = arith.mulf %172, %181 : vector<16x32xf32>
    %183 = vector.broadcast %164 : vector<1x32xf32> to vector<16x32xf32>
    %184 = arith.mulf %182, %183 : vector<16x32xf32>
    %185 = vector.broadcast %166 : vector<1x32xf32> to vector<16x32xf32>
    %186 = arith.addf %184, %185 : vector<16x32xf32>
    %c1_92 = arith.constant 1 : index
    %c0_93 = arith.constant 0 : index
    %c0_94 = arith.constant 0 : index
    %187 = vector.load %arg6[%c1_92, %c0_93, %c0_94] : memref<2x32x64xf32, #tpu.memory_space<vmem>>, vector<1x32x64xf32>
    %188 = vector.shape_cast %187 : vector<1x32x64xf32> to vector<32x64xf32>
    %cst_95 = arith.constant dense<0.000000e+00> : vector<16x64xf32>
    %189 = tpu.matmul %186, %188, %cst_95 {dimension_numbers = #tpu.dot_dimension_numbers<[1], [0], [0], [1], [0, 0, 1, 1], [], []>} : vector<16x32xf32>, vector<32x64xf32>, vector<16x64xf32> -> vector<16x64xf32>
    %c1_96 = arith.constant 1 : index
    %c4_97 = arith.constant 4 : index
    %c0_98 = arith.constant 0 : index
    %190 = vector.load %arg9[%c1_96, %c4_97, %c0_98] : memref<2x8x128xf32, #tpu.memory_space<vmem>>, vector<1x1x64xf32>
    %191 = vector.shape_cast %190 : vector<1x1x64xf32> to vector<1x64xf32>
    %192 = vector.broadcast %191 : vector<1x64xf32> to vector<16x64xf32>
    %193 = arith.addf %189, %192 : vector<16x64xf32>
    %cst_99 = arith.constant 0.000000e+00 : f32
    %194 = vector.broadcast %cst_99 : f32 to vector<16x64xf32>
    %195 = arith.maximumf %193, %194 : vector<16x64xf32>
    %c1_100 = arith.constant 1 : index
    %c0_101 = arith.constant 0 : index
    %c0_102 = arith.constant 0 : index
    %196 = vector.load %arg7[%c1_100, %c0_101, %c0_102] : memref<2x64x32xf32, #tpu.memory_space<vmem>>, vector<1x64x32xf32>
    %197 = vector.shape_cast %196 : vector<1x64x32xf32> to vector<64x32xf32>
    %cst_103 = arith.constant dense<0.000000e+00> : vector<16x32xf32>
    %198 = tpu.matmul %195, %197, %cst_103 {dimension_numbers = #tpu.dot_dimension_numbers<[1], [0], [0], [1], [0, 0, 1, 1], [], []>} : vector<16x64xf32>, vector<64x32xf32>, vector<16x32xf32> -> vector<16x32xf32>
    %c1_104 = arith.constant 1 : index
    %c5_105 = arith.constant 5 : index
    %c0_106 = arith.constant 0 : index
    %199 = vector.load %arg9[%c1_104, %c5_105, %c0_106] : memref<2x8x128xf32, #tpu.memory_space<vmem>>, vector<1x1x32xf32>
    %200 = vector.shape_cast %199 : vector<1x1x32xf32> to vector<1x32xf32>
    %201 = vector.broadcast %200 : vector<1x32xf32> to vector<16x32xf32>
    %202 = arith.addf %198, %201 : vector<16x32xf32>
    %203 = arith.addf %186, %202 : vector<16x32xf32>
    %c1_107 = arith.constant 1 : index
    %c6_108 = arith.constant 6 : index
    %c0_109 = arith.constant 0 : index
    %204 = vector.load %arg9[%c1_107, %c6_108, %c0_109] : memref<2x8x128xf32, #tpu.memory_space<vmem>>, vector<1x1x32xf32>
    %205 = vector.shape_cast %204 : vector<1x1x32xf32> to vector<1x32xf32>
    %c1_110 = arith.constant 1 : index
    %c7_111 = arith.constant 7 : index
    %c0_112 = arith.constant 0 : index
    %206 = vector.load %arg9[%c1_110, %c7_111, %c0_112] : memref<2x8x128xf32, #tpu.memory_space<vmem>>, vector<1x1x32xf32>
    %207 = vector.shape_cast %206 : vector<1x1x32xf32> to vector<1x32xf32>
    %cst_113 = arith.constant dense<0.000000e+00> : vector<16xf32>
    %208 = vector.multi_reduction <add>, %203, %cst_113 [1] : vector<16x32xf32> to vector<16xf32>
    %209 = vector.shape_cast %208 : vector<16xf32> to vector<16x1xf32>
    %cst_114 = arith.constant 3.200000e+01 : f32
    %210 = vector.broadcast %cst_114 : f32 to vector<16x1xf32>
    %211 = arith.divf %209, %210 : vector<16x1xf32>
    %212 = vector.broadcast %211 : vector<16x1xf32> to vector<16x32xf32>
    %213 = arith.subf %203, %212 : vector<16x32xf32>
    %214 = arith.mulf %213, %213 : vector<16x32xf32>
    %cst_115 = arith.constant dense<0.000000e+00> : vector<16xf32>
    %215 = vector.multi_reduction <add>, %214, %cst_115 [1] : vector<16x32xf32> to vector<16xf32>
    %216 = vector.shape_cast %215 : vector<16xf32> to vector<16x1xf32>
    %cst_116 = arith.constant 3.200000e+01 : f32
    %217 = vector.broadcast %cst_116 : f32 to vector<16x1xf32>
    %218 = arith.divf %216, %217 : vector<16x1xf32>
    %cst_117 = arith.constant 9.99999974E-6 : f32
    %219 = vector.broadcast %cst_117 : f32 to vector<16x1xf32>
    %220 = arith.addf %218, %219 : vector<16x1xf32>
    %221 = math.rsqrt %220 : vector<16x1xf32>
    %222 = vector.broadcast %221 : vector<16x1xf32> to vector<16x32xf32>
    %223 = arith.mulf %213, %222 : vector<16x32xf32>
    %224 = vector.broadcast %205 : vector<1x32xf32> to vector<16x32xf32>
    %225 = arith.mulf %223, %224 : vector<16x32xf32>
    %226 = vector.broadcast %207 : vector<1x32xf32> to vector<16x32xf32>
    %227 = arith.addf %225, %226 : vector<16x32xf32>
    %c0_118 = arith.constant 0 : index
    %c0_119 = arith.constant 0 : index
    %228 = vector.load %arg10[%c0_118, %c0_119] : memref<8x128xf32, #tpu.memory_space<vmem>>, vector<1x32xf32>
    %c1_120 = arith.constant 1 : index
    %c0_121 = arith.constant 0 : index
    %229 = vector.load %arg10[%c1_120, %c0_121] : memref<8x128xf32, #tpu.memory_space<vmem>>, vector<1x32xf32>
    %cst_122 = arith.constant dense<0.000000e+00> : vector<16xf32>
    %230 = vector.multi_reduction <add>, %227, %cst_122 [1] : vector<16x32xf32> to vector<16xf32>
    %231 = vector.shape_cast %230 : vector<16xf32> to vector<16x1xf32>
    %cst_123 = arith.constant 3.200000e+01 : f32
    %232 = vector.broadcast %cst_123 : f32 to vector<16x1xf32>
    %233 = arith.divf %231, %232 : vector<16x1xf32>
    %234 = vector.broadcast %233 : vector<16x1xf32> to vector<16x32xf32>
    %235 = arith.subf %227, %234 : vector<16x32xf32>
    %236 = arith.mulf %235, %235 : vector<16x32xf32>
    %cst_124 = arith.constant dense<0.000000e+00> : vector<16xf32>
    %237 = vector.multi_reduction <add>, %236, %cst_124 [1] : vector<16x32xf32> to vector<16xf32>
    %238 = vector.shape_cast %237 : vector<16xf32> to vector<16x1xf32>
    %cst_125 = arith.constant 3.200000e+01 : f32
    %239 = vector.broadcast %cst_125 : f32 to vector<16x1xf32>
    %240 = arith.divf %238, %239 : vector<16x1xf32>
    %cst_126 = arith.constant 9.99999974E-6 : f32
    %241 = vector.broadcast %cst_126 : f32 to vector<16x1xf32>
    %242 = arith.addf %240, %241 : vector<16x1xf32>
    %243 = math.rsqrt %242 : vector<16x1xf32>
    %244 = vector.broadcast %243 : vector<16x1xf32> to vector<16x32xf32>
    %245 = arith.mulf %235, %244 : vector<16x32xf32>
    %246 = vector.broadcast %228 : vector<1x32xf32> to vector<16x32xf32>
    %247 = arith.mulf %245, %246 : vector<16x32xf32>
    %248 = vector.broadcast %229 : vector<1x32xf32> to vector<16x32xf32>
    %249 = arith.addf %247, %248 : vector<16x32xf32>
    %c0_127 = arith.constant 0 : index
    %c0_128 = arith.constant 0 : index
    %250 = vector.load %arg8[%c0_127, %c0_128] : memref<32x128xf32, #tpu.memory_space<vmem>>, vector<32x128xf32>
    %cst_129 = arith.constant dense<0.000000e+00> : vector<16x128xf32>
    %251 = tpu.matmul %249, %250, %cst_129 {dimension_numbers = #tpu.dot_dimension_numbers<[1], [0], [0], [1], [0, 0, 1, 1], [], []>} : vector<16x32xf32>, vector<32x128xf32>, vector<16x128xf32> -> vector<16x128xf32>
    %c2_130 = arith.constant 2 : index
    %c0_131 = arith.constant 0 : index
    %252 = vector.load %arg10[%c2_130, %c0_131] : memref<8x128xf32, #tpu.memory_space<vmem>>, vector<1x128xf32>
    %253 = vector.broadcast %252 : vector<1x128xf32> to vector<16x128xf32>
    %254 = arith.addf %251, %253 : vector<16x128xf32>
    %c0_132 = arith.constant 0 : index
    %c0_133 = arith.constant 0 : index
    %255 = vector.load %arg12[%c0_132, %c0_133] : memref<16x128xf32, #tpu.memory_space<vmem>>, vector<16x128xf32>
    tpu.vector_store %arg12[%c0_132, %c0_133], %254 {strides = array<i32>} : memref<16x128xf32, #tpu.memory_space<vmem>>, vector<16x128xf32>,
    %c0_134 = arith.constant 0 : index
    %c0_135 = arith.constant 0 : index
    %256 = vector.load %arg11[%c0_134, %c0_135] : memref<16x128xf32, #tpu.memory_space<vmem>>, vector<16x128xf32>
    %257 = math.exp %254 : vector<16x128xf32>
    %258 = arith.mulf %256, %254 : vector<16x128xf32>
    %259 = arith.subf %257, %258 : vector<16x128xf32>
    %cst_136 = arith.constant -1.000000e+02 : f32
    %260 = vector.broadcast %cst_136 : f32 to vector<16x128xf32>
    %261 = arith.cmpf one, %256, %260 : vector<16x128xf32>
    %cst_137 = arith.constant 0.000000e+00 : f32
    %262 = vector.broadcast %cst_137 : f32 to vector<16x128xf32>
    %263 = arith.select %261, %259, %262 : vector<16x128xi1>, vector<16x128xf32>
    %cst_138 = arith.constant dense<0.000000e+00> : vector<16xf32>
    %264 = vector.multi_reduction <add>, %263, %cst_138 [1] : vector<16x128xf32> to vector<16xf32>
    %265 = vector.shape_cast %264 : vector<16xf32> to vector<16x1xf32>
    %cst_139 = arith.constant dense<0.000000e+00> : vector<1xf32>
    %266 = vector.multi_reduction <add>, %265, %cst_139 [0] : vector<16x1xf32> to vector<1xf32>
    %267 = vector.shape_cast %266 : vector<1xf32> to vector<1x1xf32>
    %268 = arith.extui %261 : vector<16x128xi1> to vector<16x128xi32>
    %269 = arith.sitofp %268 : vector<16x128xi32> to vector<16x128xf32>
    %cst_140 = arith.constant dense<0.000000e+00> : vector<16xf32>
    %270 = vector.multi_reduction <add>, %269, %cst_140 [1] : vector<16x128xf32> to vector<16xf32>
    %271 = vector.shape_cast %270 : vector<16xf32> to vector<16x1xf32>
    %cst_141 = arith.constant dense<0.000000e+00> : vector<1xf32>
    %272 = vector.multi_reduction <add>, %271, %cst_141 [0] : vector<16x1xf32> to vector<1xf32>
    %273 = vector.shape_cast %272 : vector<1xf32> to vector<1x1xf32>
    %274 = arith.divf %267, %273 : vector<1x1xf32>
    %c0_142 = arith.constant 0 : index
    %c0_143 = arith.constant 0 : index
    %275 = vector.load %arg13[%c0_142, %c0_143] : memref<1x1xf32, #tpu.memory_space<vmem>>, vector<1x1xf32>
    tpu.vector_store %arg13[%c0_142, %c0_143], %274 {strides = array<i32>} : memref<1x1xf32, #tpu.memory_space<vmem>>, vector<1x1xf32>,
    return
  }
}

</mosaic_0001>

<bundles_post_ra>
// kernel: neural_data_transformer_forward.1
= control target key start
LH: loop header
LB: loop body
LE: loop exit
PB: predicated region body
PF: predicated region fallthrough
CT: control target
= control target key end

     0   :  { %19 = vsyncpa [#allocation3], 0  ;;  %s3178_s0 = inlined_call_operand.hbm [shape: f32[16,32], index: 0, kind: input, shape index: {}]   ;;  %s3179_s1 = inlined_call_operand.hbm [shape: f32[16,32], index: 1, kind: input, shape index: {}]   ;;  %s3180_s2 = inlined_call_operand.hbm [shape: f32[16,16], index: 2, kind: input, shape index: {}]   ;;  %s3181_s3 = inlined_call_operand.vmem [shape: f32[32,32], index: 3, kind: input, shape index: {}]   ;;  %s3182_s4 = inlined_call_operand.vmem [shape: f32[2,32,96], index: 4, kind: input, shape index: {}]   ;;  %s3183_s5 = inlined_call_operand.vmem [shape: f32[2,32,32], index: 5, kind: input, shape index: {}]   ;;  %s3184_s6 = inlined_call_operand.vmem [shape: f32[2,32,64], index: 6, kind: input, shape index: {}]   ;;  %s3185_s7 = inlined_call_operand.vmem [shape: f32[2,64,32], index: 7, kind: input, shape index: {}]   ;;  %s3186_s8 = inlined_call_operand.hbm [shape: f32[32,128], index: 8, kind: input, shape index: {}]   ;;  %s3187_s9 = inlined_call_operand.hbm [shape: f32[2,8,128], index: 9, kind: input, shape index: {}]   ;;  %s3188_s10 = inlined_call_operand.hbm [shape: f32[8,128], index: 10, kind: input, shape index: {}]   ;;  %s3189_s11 = inlined_call_operand.vmem [shape: f32[16,128], index: 11, kind: input, shape index: {}]   ;;  %s3190_s12 = inlined_call_operand.vmem [shape: f32[16,128], index: 12, kind: output, shape index: {0}]   ;;  %s3191_s13 = inlined_call_operand.hbm [shape: f32[1,1], index: 13, kind: output, shape index: {1}]  }
   0x1   :  { %20 = vsyncpa [#allocation6], 0 }
   0x2   :  { %21 = vsyncpa [#allocation9], 0 }
   0x3   :  { %22 = vsyncpa [#allocation12], 0 }
   0x4   :  { %23 = vsyncpa [#allocation4], 0  ;;  %s2729_s25 = smov [#allocation5]   ;;  %s2730_s27 = smov [#allocation8]  }
   0x5   :  { %s41_s26 = sshll.u32 %s2729_s25, 4  ;;  %s75_s28 = sshll.u32 %s2730_s27, 4  ;;  %s42_s26 = int_to_ptr.vmem [resolvable:$true] %s41_s26  ;;  %s76_s28 = int_to_ptr.vmem [resolvable:$true] %s75_s28 }
   0x6   :  { %s2587_s29 = scalar_lea.vmem %s42_s26, 256  ;;  %p2592_p1 = scmp.lt.s32.totalorder %s42_s26, %s42_s26 }
   0x7   :  { %p2588_p0 = scmp.ne.s32.totalorder %s42_s26, %s2587_s29  ;;  %p2593_p2 = scmp.lt.s32.totalorder %s2587_s29, %s2587_s29 }
   0x9   :  { %p2594_p3 = por %p2593_p2, %p2592_p1 }
   0xb   :  { %p2595_p4 = pnand %p2594_p3, %p2588_p0 }
   0xd   :  { %2598 = shalt.err (!%p2595_p4)
}
   0xe   :  { %s2731_s30 = smov 128   ;;  %s2732_s14 = smov 8  }
   0xf   :  { %47 = dma.hbm_to_vmem [thread:$0]  %s3179_s1, 256, %s42_s26, [#allocation6], %s2731_s30, %s2731_s30, %s2732_s14  }
  0x10   :  { %s2607_s17 = scalar_lea.vmem %s76_s28, 512  ;;  %p2612_p6 = scmp.lt.s32.totalorder %s76_s28, %s76_s28 }
  0x11   :  { %p2608_p5 = scmp.ne.s32.totalorder %s76_s28, %s2607_s17  ;;  %p2613_p7 = scmp.lt.s32.totalorder %s2607_s17, %s2607_s17 }
  0x13   :  { %p2614_p8 = por %p2613_p7, %p2612_p6 }
  0x15   :  { %p2615_p9 = pnand %p2614_p8, %p2608_p5 }
  0x17   :  { %2618 = shalt.err (!%p2615_p9)
}
  0x18   :  { %81 = dma.hbm_to_vmem [thread:$0]  %s3186_s8, 512, %s76_s28, [#allocation9], %s2731_s30, %s2731_s30, %s2732_s14  }
  0x19   :  { %s2733_s20 = smov [#allocation2]   ;;  %s2734_s22 = smov [#allocation7]  }
  0x1a   :  { %s29_s21 = sshll.u32 %s2733_s20, 4  ;;  %s53_s23 = sshll.u32 %s2734_s22, 4  ;;  %s30_s21 = int_to_ptr.vmem [resolvable:$true] %s29_s21  ;;  %s54_s23 = int_to_ptr.vmem [resolvable:$true] %s53_s23 }
  0x1b   :  { %s2627_s1 = scalar_lea.vmem %s30_s21, 256  ;;  %p2632_p11 = scmp.lt.s32.totalorder %s30_s21, %s30_s21 }
  0x1c   :  { %p2628_p10 = scmp.ne.s32.totalorder %s30_s21, %s2627_s1  ;;  %p2633_p12 = scmp.lt.s32.totalorder %s2627_s1, %s2627_s1 }
  0x1e   :  { %p2634_p13 = por %p2633_p12, %p2632_p11 }
  0x20   :  { %p2635_p0 = pnand %p2634_p13, %p2628_p10 }
  0x22   :  { %2638 = shalt.err (!%p2635_p0)
}
  0x23   :  { %35 = dma.hbm_to_vmem [thread:$0]  %s3178_s0, 256, %s30_s21, [#allocation3], %s2731_s30, %s2731_s30, %s2732_s14  }
  0x24   :  { %s2647_s8 = scalar_lea.vmem %s54_s23, 256  ;;  %p2652_p2 = scmp.lt.s32.totalorder %s54_s23, %s54_s23 }
  0x25   :  { %p2648_p1 = scmp.ne.s32.totalorder %s54_s23, %s2647_s8  ;;  %p2653_p3 = scmp.lt.s32.totalorder %s2647_s8, %s2647_s8 }
  0x27   :  { %p2654_p4 = por %p2653_p3, %p2652_p2 }
  0x29   :  { %p2655_p5 = pnand %p2654_p4, %p2648_p1 }
  0x2b   :  { %2658 = shalt.err (!%p2655_p5)
}
  0x2c   :  { %59 = dma.hbm_to_vmem [thread:$0]  %s3180_s2, 256, %s54_s23, [#allocation6], %s2731_s30, %s2731_s30, %s2732_s14  }
  0x2d   :  { %s2735_s28 = smov [#allocation10]   ;;  %s2736_s15 = smov [#allocation11]  }
  0x2e   :  { %s87_s29 = sshll.u32 %s2735_s28, 4  ;;  %s100_s16 = sshll.u32 %s2736_s15, 4  ;;  %s88_s29 = int_to_ptr.vmem [resolvable:$true] %s87_s29  ;;  %s101_s16 = int_to_ptr.vmem [resolvable:$true] %s100_s16 }
  0x2f   :  { %s2667_s0 = scalar_lea.vmem %s88_s29, 256  ;;  %p2672_p7 = scmp.lt.s32.totalorder %s88_s29, %s88_s29 }
  0x30   :  { %p2668_p6 = scmp.ne.s32.totalorder %s88_s29, %s2667_s0  ;;  %p2673_p8 = scmp.lt.s32.totalorder %s2667_s0, %s2667_s0 }
  0x32   :  { %p2674_p9 = por %p2673_p8, %p2672_p7 }
  0x34   :  { %p2675_p10 = pnand %p2674_p9, %p2668_p6 }
  0x36   :  { %2678 = shalt.err (!%p2675_p10)
}
  0x37   :  { %93 = dma.hbm_to_vmem [thread:$0]  %s3187_s9, 256, %s88_s29, [#allocation9], %s2731_s30, %s2731_s30, %s2732_s14  }
  0x38   :  { %s2687_s2 = scalar_lea.vmem %s101_s16, 128  ;;  %p2692_p12 = scmp.lt.s32.totalorder %s101_s16, %s101_s16 }
  0x39   :  { %p2688_p11 = scmp.ne.s32.totalorder %s101_s16, %s2687_s2  ;;  %p2693_p13 = scmp.lt.s32.totalorder %s2687_s2, %s2687_s2 }
  0x3b   :  { %p2694_p0 = por %p2693_p13, %p2692_p12 }
  0x3d   :  { %p2695_p1 = pnand %p2694_p0, %p2688_p11 }
  0x3f   :  { %2698 = shalt.err (!%p2695_p1)
}
  0x40   :  { %103 = dma.hbm_to_vmem [thread:$0]  %s3188_s10, 128, %s101_s16, [#allocation12]  }
  0x41   :  { %2719 = dma.done.wait [#allocation3], 256  }
  0x42   :  { %2720 = vsyncadd [#allocation3], 4294967040 }
  0x43   :  { %2721 = dma.done.wait [#allocation6], 512  }
  0x44   :  { %2722 = vsyncadd [#allocation6], 4294966784 }
  0x45   :  { %2723 = dma.done.wait [#allocation9], 768  }
  0x46   :  { %2724 = vsyncadd [#allocation9], 4294966528 }
  0x47   :  { %2725 = dma.done.wait [#allocation12], 128  }
  0x48   :  { %2726 = vsyncadd [#allocation12], 4294967168  ;;  %vm132_vm0 = vcmask 261120   ;;  %v129_v0 = vld [vmem:[%s3181_s3 + $0x18] sm:$0xff]  ;;  %v128_v1 = vld [vmem:[%s3181_s3 + $0x10] sm:$0xff]  ;;  %vm312_vm1 = vcmask 130048  }
  0x49   :  { %2323 = vmatprep.subr.mxu0 %v129_v0  ;;  %v124_v2 = vld [vmem:[#allocation2] sm:$0xff]  ;;  %v127_v3 = vld [vmem:[%s3181_s3 + $0x8] sm:$0xff]  ;;  %v220_v4 = vld [vmem:[%s3182_s4 + $0x18] sm:$0xff]  ;;  %s2737_s15 = smov 96   ;;  %s2738_s16 = smov 64   ;;  %vm953_vm2 = vcmask 523264  }
  0x4a   :  { %2324 = vmatpush3.msra.mxu0 %v129_v0  ;;  %2331 = vmatprep.mubr.msk.f32.mxu0 %vm132_vm0, %v124_v2  ;;  %v126_v5 = vld [vmem:[%s3181_s3] sm:$0xff]  ;;  %v125_v6 = vld [vmem:[#allocation2 + $0x8] sm:$0xff]  ;;  %v219_v7 = vld [vmem:[%s3182_s4 + $0x10] sm:$0xff]  ;;  %s2739_s0 = smov 112   ;;  %s2740_s17 = smov 80   ;;  %vm2114_vm5 = vcmask 0  }
  0x4b   :  { %2325 = vmatprep.subr.mxu0 %v128_v1  ;;  %2334 = vmatprep.subr.mxu1 %v220_v4  ;;  %v218_v8 = vld [vmem:[%s3182_s4 + $0x8] sm:$0xff]  ;;  %v217_v9 = vld [vmem:[%s3182_s4] sm:$0xff]  ;;  %v130_v11 = vld [vmem:[#allocation5] sm:$0xff]  ;;  %s2741_s18 = smov 48   ;;  %s2742_s22 = smov 16  }
  0x4c   :  { %2326 = vmatpush3.msra.mxu0 %v128_v1  ;;  %2335 = vmatpush3.msra.mxu1 %v220_v4  ;;  %v131_v12 = vld [vmem:[#allocation5 + $0x8] sm:$0xff]  ;;  %v2140_v16 = vld [vmem:[#allocation10] ss:$0 sm:$0xff]  ;;  %v2898_v24 = vld [vmem:[#allocation7] sm:$0xff] }
  0x4d   :  { %2327 = vmatprep.subr.mxu0 %v127_v3  ;;  %2336 = vmatprep.subr.mxu1 %v219_v7  ;;  %v2900_v25 = vld [vmem:[#allocation7 + $0x8] sm:$0xff] }
  0x4e   :  { %2328 = vmatpush3.msra.mxu0 %v127_v3  ;;  %2337 = vmatpush3.msra.mxu1 %v219_v7 }
  0x4f   :  { %2329 = vmatprep.subr.mxu0 %v126_v5  ;;  %2338 = vmatprep.subr.mxu1 %v218_v8 }
  0x50   :  { %2330 = vmatpush3.msra.mxu0 %v126_v5  ;;  %2339 = vmatpush3.msra.mxu1 %v218_v8 }
  0x51   :  { %2332 = vmatmul.mubr.msk.f32.vlgmr.msra.gmra.mxu0 %vm132_vm0, %v125_v6  ;;  %2340 = vmatprep.subr.mxu1 %v217_v9 }
  0x52   :  { %2341 = vmatpush3.msra.mxu1 %v217_v9 }
 0x111   :  { %v2333_v10 = vpop.f32.mrf.mxu0 }
 0x112   :  { %v2876_v15 = vadd.f32 %v2333_v10, %v131_v12 }
 0x113   :  { %v205_v13 = vpop.f32.mrf.mxu0 }
 0x114   :  { %v2874_v14 = vadd.f32 %v205_v13, %v130_v11 }
 0x116   :  { %2342 = vmatprep.mubr.msk.f32.mxu1 %vm132_vm0, %v2874_v14 }
 0x117   :  { %2343 = vmatmul.mubr.msk.f32.vlgmr.msra.gmra.mxu1 %vm132_vm0, %v2876_v15 }
 0x1d7   :  { %v2344_v17 = vpop.f32.mrf.mxu1 }
 0x1d8   :  { %v2882_v18 = vadd.f32 %v2344_v17, %v2140_v16  ;;  %v718_v17 = vld [vmem:[%s3183_s5 + $0x18] sm:$0xff] }
 0x1d9   :  { %v297_v19 = vpop.f32.mrf.mxu1 }
 0x1da   :  { %v2884_v20 = vadd.f32 %v2140_v16, %v297_v19  ;;  %310 = vrot.lane.b32.xlu0 %v2882_v18, %s2737_s15  ;;  %v716_v19 = vld [vmem:[%s3183_s5 + $0x8] sm:$0xff] }
 0x1dc   :  { %2349 = vmatprep.mubr.msk.f32.mxu0 %vm312_vm1, %v2884_v20 }
 0x1de   :  { %308 = vrot.lane.b32.xlu0 %v2884_v20, %s2737_s15 }
 0x24c   :  { %v311_v21 = vpop.permute.xlu0 %310 }
 0x24d   :  { %2345 = vmatprep.subr.msk.mxu0 %vm312_vm1, %v311_v21 }
 0x24e   :  { %2346 = vmatpush3.xpose.msk.msra.mxu0 %vm312_vm1, %v311_v21 }
 0x250   :  { %v309_v22 = vpop.permute.xlu0 %308 }
 0x251   :  { %2347 = vmatprep.subr.msk.mxu0 %vm312_vm1, %v309_v22 }
 0x252   :  { %2348 = vmatpush3.xpose.msk.msra.mxu0 %vm312_vm1, %v309_v22 }
 0x253   :  { %2373 = vmatprep.subr.mxu0 %v718_v17 }
 0x255   :  { %2350 = vmatmul.mubr.msk.f32.vlgmr.msra.gmra.mxu0 %vm312_vm1, %v2882_v18 }
 0x256   :  { %2374 = vmatpush3.msra.mxu0 %v718_v17 }
 0x315   :  { %v2351_v23 = vpop.f32.mrf.mxu0 }
 0x316   :  { %v393_v28 = vadd.f32 %v2351_v23, %v2900_v25 }
 0x317   :  { %v387_v26 = vpop.f32.mrf.mxu0 }
 0x318   :  { %v388_v27 = vadd.f32 %v387_v26, %v2898_v24  ;;  %v399_v30 = vsel %vm312_vm1, %v393_v28, -inf }
 0x31a   :  { %v396_v29 = vsel %vm312_vm1, %v388_v27, -inf }
 0x31b   :  { %397 = vmax.xlane.f32.xlu1 %v396_v29  ;;  %v2155_v29 = vld [vmem:[#allocation10 + $0x1] ss:$0 sm:$0xff] }
 0x31f   :  { %400 = vmax.xlane.f32.xlu1 %v399_v30 }
 0x3a4   :  { %v398_v31 = vpop.xlane.xlu1 %397 }
 0x3a5   :  { %v402_v32 = vsub.f32 %v388_v27, %v398_v31 }
 0x3a7   :  { %v404_v33 = vmul.f32 1.442695, %v402_v32 }
 0x3a8   :  { %v401_v34 = vpop.xlane.xlu1 %400 }
 0x3a9   :  { %2521 = vpow2.f32 %v404_v33  ;;  %v403_v35 = vsub.f32 %v393_v28, %v401_v34 }
 0x3ab   :  { %v406_v36 = vmul.f32 1.442695, %v403_v35 }
 0x3ad   :  { %2523 = vpow2.f32 %v406_v36 }
 0x3b6   :  { %v2522_v37 = vpop.eup %2521 }
 0x3b7   :  { %v408_v38 = vsel %vm312_vm1, %v2522_v37, 0.0 }
 0x3b8   :  { %409 = vadd.xlane.f32.xlu0 %v408_v38 }
 0x3ba   :  { %v2524_v39 = vpop.eup %2523 }
 0x3bb   :  { %v411_v40 = vsel %vm312_vm1, %v2524_v39, 0.0 }
 0x3bc   :  { %412 = vadd.xlane.f32.xlu1 %v411_v40 }
 0x3cd   :  { %420 = vrot.lane.b32.xlu1 %v2882_v18, %s2738_s16 }
 0x3ce   :  { %505 = vrot.lane.b32.xlu0 %v2884_v20, %s2739_s0 }
 0x3d1   :  { %418 = vrot.lane.b32.xlu1 %v2884_v20, %s2738_s16 }
 0x3d5   :  { %511 = vrot.lane.b32.xlu1 %v2882_v18, %s2740_s17 }
 0x3d9   :  { %509 = vrot.lane.b32.xlu1 %v2884_v20, %s2740_s17 }
 0x3dd   :  { %507 = vrot.lane.b32.xlu1 %v2882_v18, %s2739_s0 }
 0x441   :  { %v410_v41 = vpop.xlane.xlu0 %409 }
 0x442   :  { %2525 = vrcp.f32 %v410_v41 }
 0x445   :  { %v413_v42 = vpop.xlane.xlu1 %412  ;;  %v506_v51 = vpop.permute.xlu0 %505 }
 0x446   :  { %2527 = vrcp.f32 %v413_v42 }
 0x449   :  { %v421_v43 = vpop.permute.xlu1 %420 }
 0x44a   :  { %2352 = vmatprep.subr.mxu1 %v421_v43 }
 0x44b   :  { %2353 = vmatpush3.msra.mxu1 %v421_v43 }
 0x44d   :  { %v419_v44 = vpop.permute.xlu1 %418 }
 0x44e   :  { %2354 = vmatprep.subr.mxu1 %v419_v44 }
 0x44f   :  { %v2526_v45 = vpop.eup %2525  ;;  %2355 = vmatpush3.msra.mxu1 %v419_v44 }
 0x450   :  { %v415_v46 = vmul.f32 %v2526_v45, %v2522_v37 }
 0x451   :  { %v512_v47 = vpop.permute.xlu1 %511 }
 0x452   :  { %2356 = vmatprep.mubr.msk.f32.mxu1 %vm312_vm1, %v415_v46  ;;  %2359 = vmatprep.subr.msk.mxu1 %vm312_vm1, %v512_v47 }
 0x453   :  { %v2528_v48 = vpop.eup %2527 }
 0x454   :  { %v417_v49 = vmul.f32 %v2528_v48, %v2524_v39  ;;  %v849_v48 = vld [vmem:[%s3184_s6 + $0x8] sm:$0xff] }
 0x455   :  { %v510_v50 = vpop.permute.xlu1 %509 }
 0x456   :  { %2357 = vmatmul.mubr.msk.f32.vlgmr.msra.gmra.mxu1 %vm312_vm1, %v417_v49  ;;  %v848_v49 = vld [vmem:[%s3184_s6] sm:$0xff] }
 0x457   :  { %2360 = vmatpush3.xpose.msk.msra.mxu1 %vm312_vm1, %v512_v47  ;;  %2363 = vmatprep.mubr.msk.f32.mxu1 %vm312_vm1, %v506_v51  ;;  %v850_v47 = vld [vmem:[%s3184_s6 + $0x10] sm:$0xff] }
 0x458   :  { %2361 = vmatprep.subr.msk.mxu1 %vm312_vm1, %v510_v50  ;;  %v946_v51 = vld [vmem:[%s3185_s7 + $0x30] sm:$0xff] }
 0x459   :  { %v508_v52 = vpop.permute.xlu1 %507 }
 0x45b   :  { %2362 = vmatpush3.xpose.msk.msra.mxu1 %vm312_vm1, %v510_v50  ;;  %v947_v50 = vld [vmem:[%s3185_s7 + $0x38] sm:$0xff] }
 0x45e   :  { %2364 = vmatmul.mubr.msk.f32.vlgmr.msra.gmra.mxu1 %vm312_vm1, %v508_v52  ;;  %v945_v52 = vld [vmem:[%s3185_s7 + $0x28] sm:$0xff] }
 0x516   :  { %v2928_v53 = vpop.f32.mrf.mxu1 }
 0x518   :  { %v496_v54 = vpop.f32.mrf.mxu1 }
 0x51e   :  { %v2365_v55 = vpop.f32.mrf.mxu1 }
 0x51f   :  { %v593_v56 = vadd.f32 %v2365_v55, %v2900_v25 }
 0x520   :  { %v587_v57 = vpop.f32.mrf.mxu1 }
 0x521   :  { %v588_v58 = vadd.f32 %v587_v57, %v2898_v24  ;;  %v599_v59 = vsel %vm312_vm1, %v593_v56, -inf }
 0x522   :  { %600 = vmax.xlane.f32.xlu0 %v599_v59 }
 0x523   :  { %v596_v60 = vsel %vm312_vm1, %v588_v58, -inf }
 0x524   :  { %597 = vmax.xlane.f32.xlu1 %v596_v60 }
 0x538   :  { %618 = vrot.lane.b32.xlu0 %v2884_v20, %s2741_s18  ;;  %v715_v20 = vld [vmem:[%s3183_s5] sm:$0xff] }
 0x5ab   :  { %v601_v61 = vpop.xlane.xlu0 %600 }
 0x5ac   :  { %v603_v62 = vsub.f32 %v593_v56, %v601_v61  ;;  %v2158_v61 = vld [vmem:[#allocation10 + $0x2] ss:$0 sm:$0xff] }
 0x5ad   :  { %v598_v63 = vpop.xlane.xlu1 %597 }
 0x5ae   :  { %v606_v0 = vmul.f32 1.442695, %v603_v62  ;;  %v602_v1 = vsub.f32 %v588_v58, %v598_v63  ;;  %v2159_v63 = vld [vmem:[#allocation10 + $0x3] ss:$0 sm:$0xff] }
 0x5af   :  { %v619_v10 = vpop.permute.xlu0 %618 }
 0x5b0   :  { %2529 = vpow2.f32 %v606_v0  ;;  %v604_v2 = vmul.f32 1.442695, %v602_v1 }
 0x5b2   :  { %2531 = vpow2.f32 %v604_v2 }
 0x5bd   :  { %v2530_v3 = vpop.eup %2529 }
 0x5be   :  { %v611_v4 = vsel %vm312_vm1, %v2530_v3, 0.0 }
 0x5bf   :  { %v2532_v5 = vpop.eup %2531  ;;  %612 = vadd.xlane.f32.xlu1 %v611_v4 }
 0x5c0   :  { %v608_v6 = vsel %vm312_vm1, %v2532_v5, 0.0 }
 0x5c3   :  { %609 = vadd.xlane.f32.xlu1 %v608_v6  ;;  %v943_v6 = vld [vmem:[%s3185_s7 + $0x18] sm:$0xff] }
 0x5d4   :  { %620 = vrot.lane.b32.xlu1 %v2882_v18, %s2741_s18  ;;  %v717_v18 = vld [vmem:[%s3183_s5 + $0x10] sm:$0xff] }
 0x5d5   :  { %2375 = vmatprep.subr.mxu0 %v717_v18 }
 0x5d6   :  { %2376 = vmatpush3.msra.mxu0 %v717_v18 }
 0x5d7   :  { %2377 = vmatprep.subr.mxu0 %v716_v19 }
 0x5d8   :  { %2378 = vmatpush3.msra.mxu0 %v716_v19  ;;  %v2163_v19 = vld [vmem:[#allocation10 + $0x5] ss:$0 sm:$0xff] }
 0x5d9   :  { %2379 = vmatprep.subr.mxu0 %v715_v20 }
 0x5da   :  { %2380 = vmatpush3.msra.mxu0 %v715_v20 }
 0x5db   :  { %2395 = vmatprep.subr.mxu0 %v947_v50 }
 0x648   :  { %v613_v7 = vpop.xlane.xlu1 %612 }
 0x649   :  { %2533 = vrcp.f32 %v613_v7  ;;  %v942_v7 = vld [vmem:[%s3185_s7 + $0x10] sm:$0xff] }
 0x64c   :  { %v610_v8 = vpop.xlane.xlu1 %609 }
 0x64d   :  { %2535 = vrcp.f32 %v610_v8  ;;  %v941_v8 = vld [vmem:[%s3185_s7 + $0x8] sm:$0xff] }
 0x650   :  { %v621_v9 = vpop.permute.xlu1 %620 }
 0x651   :  { %2366 = vmatprep.subr.mxu1 %v621_v9 }
 0x652   :  { %2367 = vmatpush3.msra.mxu1 %v621_v9  ;;  %v940_v9 = vld [vmem:[%s3185_s7] sm:$0xff] }
 0x653   :  { %2368 = vmatprep.subr.mxu1 %v619_v10 }
 0x654   :  { %2369 = vmatpush3.msra.mxu1 %v619_v10  ;;  %v2160_v10 = vld [vmem:[#allocation10 + $0x4] ss:$0 sm:$0xff] }
 0x656   :  { %v2534_v11 = vpop.eup %2533 }
 0x657   :  { %v617_v16 = vmul.f32 %v2534_v11, %v2530_v3 }
 0x65a   :  { %v2536_v12 = vpop.eup %2535 }
 0x65b   :  { %v615_v13 = vmul.f32 %v2536_v12, %v2532_v5 }
 0x65d   :  { %2370 = vmatprep.mubr.msk.f32.mxu1 %vm312_vm1, %v615_v13 }
 0x65e   :  { %2371 = vmatmul.mubr.msk.f32.vlgmr.msra.gmra.mxu1 %vm312_vm1, %v617_v16 }
 0x71e   :  { %v2372_v21 = vpop.f32.mrf.mxu1 }
 0x720   :  { %v696_v22 = vpop.f32.mrf.mxu1 }
 0x721   :  { %707 = vrot.lane.b32.xlu1 %v696_v22, %s2742_s22 }
 0x725   :  { %709 = vrot.lane.b32.xlu1 %v2372_v21, %s2742_s22 }
 0x793   :  { %v708_v23 = vpop.permute.xlu1 %707 }
 0x794   :  { %v713_v26 = vsel %vm312_vm1, %v496_v54, %v708_v23 }
 0x795   :  { %2381 = vmatprep.mubr.msk.f32.mxu0 %vm132_vm0, %v713_v26 }
 0x797   :  { %v710_v27 = vpop.permute.xlu1 %709 }
 0x798   :  { %v714_v28 = vsel %vm312_vm1, %v2928_v53, %v710_v27  ;;  %v944_v53 = vld [vmem:[%s3185_s7 + $0x20] sm:$0xff] }
 0x799   :  { %2382 = vmatmul.mubr.msk.f32.vlgmr.msra.gmra.mxu0 %vm132_vm0, %v714_v28 }
 0x79a   :  { %2396 = vmatpush3.msra.mxu0 %v947_v50 }
 0x79b   :  { %2397 = vmatprep.subr.mxu0 %v946_v51 }
 0x79c   :  { %2398 = vmatpush3.msra.mxu0 %v946_v51 }
 0x79d   :  { %2399 = vmatprep.subr.mxu0 %v945_v52 }
 0x79e   :  { %2400 = vmatpush3.msra.mxu0 %v945_v52 }
 0x79f   :  { %2401 = vmatprep.subr.mxu0 %v944_v53 }
 0x7a0   :  { %2402 = vmatpush3.msra.mxu0 %v944_v53 }
 0x7a1   :  { %2403 = vmatprep.subr.mxu0 %v943_v6 }
 0x7a2   :  { %2404 = vmatpush3.msra.mxu0 %v943_v6 }
 0x7a3   :  { %2405 = vmatprep.subr.mxu0 %v942_v7 }
 0x7a4   :  { %2406 = vmatpush3.msra.mxu0 %v942_v7 }
 0x7a5   :  { %2407 = vmatprep.subr.mxu0 %v941_v8 }
 0x7a6   :  { %2408 = vmatpush3.msra.mxu0 %v941_v8 }
 0x7a7   :  { %2409 = vmatprep.subr.mxu0 %v940_v9 }
 0x7a8   :  { %2410 = vmatpush3.msra.mxu0 %v940_v9 }
 0x859   :  { %v2383_v30 = vpop.f32.mrf.mxu0 }
 0x85a   :  { %v802_v31 = vadd.f32 %v2383_v30, %v2155_v29 }
 0x85b   :  { %v796_v32 = vpop.f32.mrf.mxu0 }
 0x85c   :  { %v797_v33 = vadd.f32 %v2155_v29, %v796_v32  ;;  %v806_v34 = vadd.f32 %v802_v31, %v2876_v15 }
 0x85e   :  { %v812_v35 = vsel %vm132_vm0, %v806_v34, 0.0  ;;  %v805_v36 = vadd.f32 %v797_v33, %v2874_v14  ;;  %v851_v14 = vld [vmem:[%s3184_s6 + $0x18] sm:$0xff] }
 0x85f   :  { %813 = vadd.xlane.f32.xlu1 %v812_v35  ;;  %2384 = vmatprep.subr.mxu1 %v851_v14 }
 0x860   :  { %v809_v37 = vsel %vm132_vm0, %v805_v36, 0.0  ;;  %2385 = vmatpush3.msra.mxu1 %v851_v14 }
 0x861   :  { %810 = vadd.xlane.f32.xlu0 %v809_v37  ;;  %2386 = vmatprep.subr.mxu1 %v850_v47 }
 0x862   :  { %2387 = vmatpush3.msra.mxu1 %v850_v47 }
 0x863   :  { %2388 = vmatprep.subr.mxu1 %v849_v48 }
 0x864   :  { %2389 = vmatpush3.msra.mxu1 %v849_v48 }
 0x865   :  { %2390 = vmatprep.subr.mxu1 %v848_v49 }
 0x866   :  { %2391 = vmatpush3.msra.mxu1 %v848_v49  ;;  %v2166_v49 = vld [vmem:[#allocation10 + $0x6] ss:$0 sm:$0xff] }
 0x8e8   :  { %v814_v38 = vpop.xlane.xlu1 %813 }
 0x8e9   :  { %v817_v39 = vmul.f32 0.03125, %v814_v38 }
 0x8ea   :  { %v811_v40 = vpop.xlane.xlu0 %810 }
 0x8eb   :  { %v816_v41 = vmul.f32 0.03125, %v811_v40  ;;  %v819_v42 = vsub.f32 %v806_v34, %v817_v39  ;;  %v2171_v40 = vld [vmem:[%s3182_s4 + $0x38] sm:$0xff] }
 0x8ec   :  { %2414 = vmatprep.subr.mxu1 %v2171_v40 }
 0x8ed   :  { %v818_v43 = vsub.f32 %v805_v36, %v816_v41  ;;  %v821_v46 = vmul.f32 %v819_v42, %v819_v42  ;;  %v2170_v41 = vld [vmem:[%s3182_s4 + $0x30] sm:$0xff] }
 0x8ef   :  { %v820_v44 = vmul.f32 %v818_v43, %v818_v43  ;;  %v825_v15 = vsel %vm132_vm0, %v821_v46, 0.0 }
 0x8f1   :  { %v822_v45 = vsel %vm132_vm0, %v820_v44, 0.0 }
 0x8f2   :  { %823 = vadd.xlane.f32.xlu0 %v822_v45 }
 0x8f6   :  { %826 = vadd.xlane.f32.xlu0 %v825_v15 }
 0x97b   :  { %v824_v54 = vpop.xlane.xlu0 %823 }
 0x97c   :  { %v828_v55 = vmul.f32 0.03125, %v824_v54  ;;  %v2167_v54 = vld [vmem:[#allocation10 + $0x7] ss:$0 sm:$0xff] }
 0x97e   :  { %v830_v56 = vadd.f32 1e-05, %v828_v55 }
 0x97f   :  { %v827_v57 = vpop.xlane.xlu0 %826 }
 0x980   :  { %2537 = vrsqrt.f32 %v830_v56  ;;  %v829_v58 = vmul.f32 0.03125, %v827_v57 }
 0x982   :  { %v831_v59 = vadd.f32 1e-05, %v829_v58  ;;  %v2172_v58 = vld [vmem:[#allocation10 + $0x8] ss:$0 sm:$0xff] }
 0x984   :  { %2539 = vrsqrt.f32 %v831_v59 }
 0x98d   :  { %v2538_v60 = vpop.eup %2537 }
 0x98e   :  { %v834_v62 = vmul.f32 %v2538_v60, %v818_v43  ;;  %v2168_v43 = vld [vmem:[%s3182_s4 + $0x20] sm:$0xff] }
 0x990   :  { %v840_v0 = vmul.f32 %v2158_v61, %v834_v62 }
 0x991   :  { %v2540_v1 = vpop.eup %2539 }
 0x992   :  { %v835_v2 = vmul.f32 %v2540_v1, %v819_v42  ;;  %v846_v3 = vadd.f32 %v2159_v63, %v840_v0  ;;  %v2169_v42 = vld [vmem:[%s3182_s4 + $0x28] sm:$0xff] }
 0x994   :  { %v841_v4 = vmul.f32 %v2158_v61, %v835_v2  ;;  %2392 = vmatprep.mubr.msk.f32.mxu1 %vm132_vm0, %v846_v3 }
 0x996   :  { %v847_v5 = vadd.f32 %v2159_v63, %v841_v4 }
 0x998   :  { %2393 = vmatmul.mubr.msk.f32.vlgmr.msra.gmra.mxu1 %vm132_vm0, %v847_v5 }
 0x999   :  { %2415 = vmatpush3.msra.mxu1 %v2171_v40 }
 0x99a   :  { %2416 = vmatprep.subr.mxu1 %v2170_v41 }
 0x99b   :  { %2417 = vmatpush3.msra.mxu1 %v2170_v41 }
 0x99c   :  { %2418 = vmatprep.subr.mxu1 %v2169_v42 }
 0x99d   :  { %2419 = vmatpush3.msra.mxu1 %v2169_v42 }
 0x99e   :  { %2420 = vmatprep.subr.mxu1 %v2168_v43 }
 0x99f   :  { %2421 = vmatpush3.msra.mxu1 %v2168_v43 }
 0xa58   :  { %v2394_v11 = vpop.f32.mrf.mxu1 }
 0xa59   :  { %v935_v12 = vadd.f32 %v2394_v11, %v2160_v10 }
 0xa5a   :  { %v929_v13 = vpop.f32.mrf.mxu1 }
 0xa5b   :  { %v930_v16 = vadd.f32 %v2160_v10, %v929_v13  ;;  %v939_v18 = vmax.f32 %v935_v12, 0.0 }
 0xa5d   :  { %v938_v17 = vmax.f32 %v930_v16, 0.0 }
 0xa5f   :  { %2411 = vmatprep.mubr.msk.f32.mxu0 %vm953_vm2, %v938_v17 }
 0xa60   :  { %2412 = vmatmul.mubr.msk.f32.vlgmr.msra.gmra.mxu0 %vm953_vm2, %v939_v18 }
 0xb20   :  { %v2413_v20 = vpop.f32.mrf.mxu0 }
 0xb21   :  { %v1032_v21 = vadd.f32 %v2413_v20, %v2163_v19 }
 0xb22   :  { %v1026_v22 = vpop.f32.mrf.mxu0 }
 0xb23   :  { %v1027_v23 = vadd.f32 %v2163_v19, %v1026_v22  ;;  %v1036_v26 = vadd.f32 %v1032_v21, %v847_v5 }
 0xb25   :  { %v1042_v27 = vsel %vm132_vm0, %v1036_v26, 0.0  ;;  %v1035_v28 = vadd.f32 %v1027_v23, %v846_v3 }
 0xb26   :  { %1043 = vadd.xlane.f32.xlu0 %v1042_v27 }
 0xb27   :  { %v1039_v29 = vsel %vm132_vm0, %v1035_v28, 0.0 }
 0xb28   :  { %1040 = vadd.xlane.f32.xlu1 %v1039_v29 }
 0xbaf   :  { %v1044_v30 = vpop.xlane.xlu0 %1043 }
 0xbb0   :  { %v1046_v31 = vmul.f32 0.03125, %v1044_v30 }
 0xbb1   :  { %v1041_v32 = vpop.xlane.xlu1 %1040 }
 0xbb2   :  { %v1048_v33 = vsub.f32 %v1036_v26, %v1046_v31  ;;  %v1045_v34 = vmul.f32 0.03125, %v1041_v32 }
 0xbb4   :  { %v1047_v35 = vsub.f32 %v1035_v28, %v1045_v34  ;;  %v1050_v36 = vmul.f32 %v1048_v33, %v1048_v33 }
 0xbb6   :  { %v1054_v37 = vsel %vm132_vm0, %v1050_v36, 0.0  ;;  %v1049_v38 = vmul.f32 %v1047_v35, %v1047_v35 }
 0xbb7   :  { %1055 = vadd.xlane.f32.xlu0 %v1054_v37 }
 0xbb8   :  { %v1051_v39 = vsel %vm132_vm0, %v1049_v38, 0.0 }
 0xbb9   :  { %1052 = vadd.xlane.f32.xlu1 %v1051_v39 }
 0xc40   :  { %v1056_v44 = vpop.xlane.xlu0 %1055 }
 0xc41   :  { %v1058_v45 = vmul.f32 0.03125, %v1056_v44 }
 0xc42   :  { %v1053_v46 = vpop.xlane.xlu1 %1052 }
 0xc43   :  { %v1060_v15 = vadd.f32 1e-05, %v1058_v45  ;;  %v1057_v14 = vmul.f32 0.03125, %v1053_v46 }
 0xc45   :  { %2541 = vrsqrt.f32 %v1060_v15  ;;  %v1059_v47 = vadd.f32 1e-05, %v1057_v14 }
 0xc47   :  { %2543 = vrsqrt.f32 %v1059_v47 }
 0xc52   :  { %v2542_v48 = vpop.eup %2541 }
 0xc53   :  { %v1064_v50 = vmul.f32 %v2542_v48, %v1048_v33 }
 0xc54   :  { %v2544_v51 = vpop.eup %2543 }
 0xc55   :  { %v1063_v52 = vmul.f32 %v2544_v51, %v1047_v35  ;;  %v1070_v53 = vmul.f32 %v2166_v49, %v1064_v50 }
 0xc57   :  { %v1069_v55 = vmul.f32 %v2166_v49, %v1063_v52  ;;  %v3025_v57 = vadd.f32 %v2167_v54, %v1070_v53  ;;  %v2190_v53 = vld [vmem:[%s3183_s5 + $0x38] sm:$0xff] }
 0xc59   :  { %v3023_v56 = vadd.f32 %v2167_v54, %v1069_v55  ;;  %v2189_v54 = vld [vmem:[%s3183_s5 + $0x30] sm:$0xff]  ;;  %v2188_v55 = vld [vmem:[%s3183_s5 + $0x28] sm:$0xff] }
 0xc5b   :  { %2422 = vmatprep.mubr.msk.f32.mxu1 %vm132_vm0, %v3023_v56 }
 0xc5c   :  { %2423 = vmatmul.mubr.msk.f32.vlgmr.msra.gmra.mxu1 %vm132_vm0, %v3025_v57 }
 0xd1c   :  { %v2424_v59 = vpop.f32.mrf.mxu1 }
 0xd1d   :  { %v3031_v60 = vadd.f32 %v2424_v59, %v2172_v58 }
 0xd1e   :  { %v1160_v61 = vpop.f32.mrf.mxu1 }
 0xd1f   :  { %v3033_v62 = vadd.f32 %v2172_v58, %v1160_v61  ;;  %1173 = vrot.lane.b32.xlu1 %v3031_v60, %s2737_s15  ;;  %v2187_v58 = vld [vmem:[%s3183_s5 + $0x20] sm:$0xff] }
 0xd21   :  { %1171 = vrot.lane.b32.xlu0 %v3033_v62, %s2737_s15  ;;  %2429 = vmatprep.mubr.msk.f32.mxu1 %vm312_vm1, %v3033_v62 }
 0xd23   :  { %1373 = vrot.lane.b32.xlu1 %v3031_v60, %s2740_s17 }
 0xd25   :  { %1367 = vrot.lane.b32.xlu0 %v3033_v62, %s2739_s0 }
 0xd27   :  { %1371 = vrot.lane.b32.xlu1 %v3033_v62, %s2740_s17 }
 0xd2b   :  { %1369 = vrot.lane.b32.xlu1 %v3031_v60, %s2739_s0 }
 0xd91   :  { %v1174_v63 = vpop.permute.xlu1 %1173 }
 0xd92   :  { %2425 = vmatprep.subr.msk.mxu1 %vm312_vm1, %v1174_v63 }
 0xd93   :  { %2426 = vmatpush3.xpose.msk.msra.mxu1 %vm312_vm1, %v1174_v63  ;;  %v1172_v0 = vpop.permute.xlu0 %1171 }
 0xd94   :  { %2427 = vmatprep.subr.msk.mxu1 %vm312_vm1, %v1172_v0 }
 0xd95   :  { %v1374_v1 = vpop.permute.xlu1 %1373 }
 0xd97   :  { %2428 = vmatpush3.xpose.msk.msra.mxu1 %vm312_vm1, %v1172_v0  ;;  %v1368_v2 = vpop.permute.xlu0 %1367 }
 0xd98   :  { %2439 = vmatprep.subr.msk.mxu1 %vm312_vm1, %v1374_v1 }
 0xd99   :  { %v1372_v3 = vpop.permute.xlu1 %1371 }
 0xd9a   :  { %2430 = vmatmul.mubr.msk.f32.vlgmr.msra.gmra.mxu1 %vm312_vm1, %v3031_v60 }
 0xd9b   :  { %2440 = vmatpush3.xpose.msk.msra.mxu1 %vm312_vm1, %v1374_v1  ;;  %2443 = vmatprep.mubr.msk.f32.mxu1 %vm312_vm1, %v1368_v2 }
 0xd9c   :  { %2441 = vmatprep.subr.msk.mxu1 %vm312_vm1, %v1372_v3 }
 0xd9d   :  { %v1370_v4 = vpop.permute.xlu1 %1369 }
 0xd9f   :  { %2442 = vmatpush3.xpose.msk.msra.mxu1 %vm312_vm1, %v1372_v3  ;;  %v2191_v3 = vld [vmem:[#allocation10 + $0x9] ss:$0 sm:$0xff] }
 0xda2   :  { %2444 = vmatmul.mubr.msk.f32.vlgmr.msra.gmra.mxu1 %vm312_vm1, %v1370_v4 }
 0xe5a   :  { %v2431_v5 = vpop.f32.mrf.mxu1 }
 0xe5b   :  { %v1255_v6 = vadd.f32 %v2431_v5, %v2900_v25 }
 0xe5c   :  { %v1249_v7 = vpop.f32.mrf.mxu1 }
 0xe5d   :  { %v1250_v8 = vadd.f32 %v1249_v7, %v2898_v24  ;;  %v1261_v9 = vsel %vm312_vm1, %v1255_v6, -inf }
 0xe5e   :  { %1262 = vmax.xlane.f32.xlu1 %v1261_v9 }
 0xe5f   :  { %v1258_v10 = vsel %vm312_vm1, %v1250_v8, -inf }
 0xe60   :  { %1259 = vmax.xlane.f32.xlu0 %v1258_v10 }
 0xe62   :  { %v2445_v11 = vpop.f32.mrf.mxu1 }
 0xe63   :  { %v1455_v16 = vadd.f32 %v2445_v11, %v2900_v25 }
 0xe64   :  { %v1449_v12 = vpop.f32.mrf.mxu1 }
 0xe65   :  { %v1450_v13 = vadd.f32 %v1449_v12, %v2898_v24  ;;  %v1461_v18 = vsel %vm312_vm1, %v1455_v16, -inf }
 0xe67   :  { %v1458_v17 = vsel %vm312_vm1, %v1450_v13, -inf }
 0xe68   :  { %1459 = vmax.xlane.f32.xlu0 %v1458_v17 }
 0xe6c   :  { %1462 = vmax.xlane.f32.xlu0 %v1461_v18 }
 0xe6f   :  { %1282 = vrot.lane.b32.xlu1 %v3031_v60, %s2738_s16 }
 0xee7   :  { %v1263_v19 = vpop.xlane.xlu1 %1262 }
 0xee8   :  { %v1265_v20 = vsub.f32 %v1255_v6, %v1263_v19 }
 0xee9   :  { %v1260_v21 = vpop.xlane.xlu0 %1259 }
 0xeea   :  { %v1268_v22 = vmul.f32 1.442695, %v1265_v20  ;;  %v1264_v23 = vsub.f32 %v1250_v8, %v1260_v21 }
 0xeeb   :  { %v1283_v26 = vpop.permute.xlu1 %1282 }
 0xeec   :  { %2545 = vpow2.f32 %v1268_v22  ;;  %v1266_v27 = vmul.f32 1.442695, %v1264_v23  ;;  %2432 = vmatprep.subr.mxu0 %v1283_v26  ;;  %v2198_v23 = vld [vmem:[%s3184_s6 + $0x30] sm:$0xff] }
 0xeed   :  { %2433 = vmatpush3.msra.mxu0 %v1283_v26  ;;  %v2197_v26 = vld [vmem:[%s3184_s6 + $0x28] sm:$0xff] }
 0xeee   :  { %2547 = vpow2.f32 %v1266_v27  ;;  %v2196_v27 = vld [vmem:[%s3184_s6 + $0x20] sm:$0xff] }
 0xef1   :  { %v1460_v24 = vpop.xlane.xlu0 %1459 }
 0xef2   :  { %v1464_v36 = vsub.f32 %v1450_v13, %v1460_v24  ;;  %v2210_v24 = vld [vmem:[%s3185_s7 + $0x78] sm:$0xff] }
 0xef4   :  { %v1466_v37 = vmul.f32 1.442695, %v1464_v36 }
 0xef5   :  { %v1463_v25 = vpop.xlane.xlu0 %1462 }
 0xef6   :  { %v1465_v28 = vsub.f32 %v1455_v16, %v1463_v25  ;;  %v2209_v25 = vld [vmem:[%s3185_s7 + $0x70] sm:$0xff] }
 0xef8   :  { %v1468_v29 = vmul.f32 1.442695, %v1465_v28  ;;  %v2208_v28 = vld [vmem:[%s3185_s7 + $0x68] sm:$0xff] }
 0xef9   :  { %v2546_v30 = vpop.eup %2545 }
 0xefa   :  { %2549 = vpow2.f32 %v1468_v29  ;;  %v1273_v31 = vsel %vm312_vm1, %v2546_v30, 0.0  ;;  %v2207_v29 = vld [vmem:[%s3185_s7 + $0x60] sm:$0xff] }
 0xefb   :  { %v2548_v32 = vpop.eup %2547  ;;  %1274 = vadd.xlane.f32.xlu0 %v1273_v31  ;;  %2551 = vpow2.f32 %v1466_v37  ;;  %v2194_v37 = vld [vmem:[#allocation10 + $0xa] ss:$0 sm:$0xff] }
 0xefc   :  { %v1270_v33 = vsel %vm312_vm1, %v2548_v32, 0.0 }
 0xefd   :  { %1271 = vadd.xlane.f32.xlu1 %v1270_v33 }
 0xf07   :  { %v2550_v34 = vpop.eup %2549 }
 0xf08   :  { %v1473_v35 = vsel %vm312_vm1, %v2550_v34, 0.0  ;;  %v2552_v38 = vpop.eup %2551 }
 0xf09   :  { %1474 = vadd.xlane.f32.xlu0 %v1473_v35  ;;  %v1470_v39 = vsel %vm312_vm1, %v2552_v38, 0.0 }
 0xf0e   :  { %1482 = vrot.lane.b32.xlu1 %v3031_v60, %s2741_s18 }
 0xf1f   :  { %1280 = vrot.lane.b32.xlu0 %v3033_v62, %s2738_s16 }
 0xf32   :  { %1471 = vadd.xlane.f32.xlu1 %v1470_v39  ;;  %v2195_v39 = vld [vmem:[#allocation10 + $0xb] ss:$0 sm:$0xff] }
 0xf43   :  { %1480 = vrot.lane.b32.xlu1 %v3033_v62, %s2741_s18 }
 0xf84   :  { %v1275_v40 = vpop.xlane.xlu0 %1274 }
 0xf85   :  { %2553 = vrcp.f32 %v1275_v40 }
 0xf86   :  { %v1272_v41 = vpop.xlane.xlu1 %1271 }
 0xf87   :  { %2555 = vrcp.f32 %v1272_v41 }
 0xf8a   :  { %v1483_v14 = vpop.permute.xlu1 %1482 }
 0xf92   :  { %v1475_v42 = vpop.xlane.xlu0 %1474  ;;  %v2554_v43 = vpop.eup %2553 }
 0xf93   :  { %v1279_v15 = vmul.f32 %v2554_v43, %v2546_v30  ;;  %2557 = vrcp.f32 %v1475_v42 }
 0xf94   :  { %v2556_v44 = vpop.eup %2555 }
 0xf95   :  { %v1277_v45 = vmul.f32 %v2556_v44, %v2548_v32 }
 0xf96   :  { %v1281_v46 = vpop.permute.xlu0 %1280 }
 0xf97   :  { %2434 = vmatprep.subr.mxu0 %v1281_v46  ;;  %2436 = vmatprep.mubr.msk.f32.mxu0 %vm312_vm1, %v1277_v45 }
 0xf98   :  { %2435 = vmatpush3.msra.mxu0 %v1281_v46  ;;  %v2206_v46 = vld [vmem:[%s3185_s7 + $0x58] sm:$0xff] }
 0xf99   :  { %2437 = vmatmul.mubr.msk.f32.vlgmr.msra.gmra.mxu0 %vm312_vm1, %v1279_v15  ;;  %2446 = vmatprep.subr.mxu0 %v1483_v14  ;;  %v2205_v15 = vld [vmem:[%s3185_s7 + $0x50] sm:$0xff] }
 0xf9a   :  { %2447 = vmatpush3.msra.mxu0 %v1483_v14  ;;  %v2204_v14 = vld [vmem:[%s3185_s7 + $0x48] sm:$0xff] }
 0xfa0   :  { %v2558_v49 = vpop.eup %2557 }
 0xfa1   :  { %v1479_v52 = vmul.f32 %v2558_v49, %v2550_v34 }
 0xfbb   :  { %v1472_v47 = vpop.xlane.xlu1 %1471 }
 0xfbc   :  { %2559 = vrcp.f32 %v1472_v47  ;;  %v2203_v47 = vld [vmem:[%s3185_s7 + $0x40] sm:$0xff] }
 0xfbf   :  { %v1481_v48 = vpop.permute.xlu1 %1480 }
 0xfc0   :  { %2448 = vmatprep.subr.mxu0 %v1481_v48 }
 0xfc1   :  { %2449 = vmatpush3.msra.mxu0 %v1481_v48  ;;  %v2200_v48 = vld [vmem:[#allocation10 + $0xc] ss:$0 sm:$0xff] }
 0xfc2   :  { %2453 = vmatprep.subr.mxu0 %v2190_v53 }
 0xfc9   :  { %v2560_v50 = vpop.eup %2559 }
 0xfca   :  { %v1477_v51 = vmul.f32 %v2560_v50, %v2552_v38 }
 0xfcc   :  { %2450 = vmatprep.mubr.msk.f32.mxu0 %vm312_vm1, %v1477_v51 }
 0xfcd   :  { %2451 = vmatmul.mubr.msk.f32.vlgmr.msra.gmra.mxu0 %vm312_vm1, %v1479_v52 }
 0xfce   :  { %2454 = vmatpush3.msra.mxu0 %v2190_v53 }
 0xfcf   :  { %2455 = vmatprep.subr.mxu0 %v2189_v54 }
 0xfd0   :  { %2456 = vmatpush3.msra.mxu0 %v2189_v54 }
 0xfd1   :  { %2457 = vmatprep.subr.mxu0 %v2188_v55 }
 0xfd2   :  { %2458 = vmatpush3.msra.mxu0 %v2188_v55  ;;  %v2211_v55 = vld [vmem:[#allocation10 + $0xd] ss:$0 sm:$0xff] }
 0xfd3   :  { %2459 = vmatprep.subr.mxu0 %v2187_v58 }
 0xfd4   :  { %2460 = vmatpush3.msra.mxu0 %v2187_v58 }
 0xfd5   :  { %2475 = vmatprep.subr.mxu0 %v2210_v24 }
0x1059   :  { %v2438_v59 = vpop.f32.mrf.mxu0 }
0x105b   :  { %v1358_v60 = vpop.f32.mrf.mxu0 }
0x108d   :  { %v2452_v61 = vpop.f32.mrf.mxu0 }
0x108e   :  { %1571 = vrot.lane.b32.xlu1 %v2452_v61, %s2742_s22 }
0x108f   :  { %v1558_v62 = vpop.f32.mrf.mxu0 }
0x1090   :  { %1569 = vrot.lane.b32.xlu0 %v1558_v62, %s2742_s22 }
0x1100   :  { %v1572_v63 = vpop.permute.xlu1 %1571 }
0x1101   :  { %v1576_v2 = vsel %vm312_vm1, %v2438_v59, %v1572_v63 }
0x1102   :  { %v1570_v0 = vpop.permute.xlu0 %1569 }
0x1103   :  { %v1575_v1 = vsel %vm312_vm1, %v1358_v60, %v1570_v0 }
0x1104   :  { %2461 = vmatprep.mubr.msk.f32.mxu0 %vm132_vm0, %v1575_v1 }
0x1105   :  { %2462 = vmatmul.mubr.msk.f32.vlgmr.msra.gmra.mxu0 %vm132_vm0, %v1576_v2 }
0x1106   :  { %2476 = vmatpush3.msra.mxu0 %v2210_v24 }
0x1107   :  { %2477 = vmatprep.subr.mxu0 %v2209_v25 }
0x1108   :  { %2478 = vmatpush3.msra.mxu0 %v2209_v25 }
0x1109   :  { %2479 = vmatprep.subr.mxu0 %v2208_v28 }
0x110a   :  { %2480 = vmatpush3.msra.mxu0 %v2208_v28 }
0x110b   :  { %2481 = vmatprep.subr.mxu0 %v2207_v29 }
0x110c   :  { %2482 = vmatpush3.msra.mxu0 %v2207_v29 }
0x110d   :  { %2483 = vmatprep.subr.mxu0 %v2206_v46 }
0x110e   :  { %2484 = vmatpush3.msra.mxu0 %v2206_v46 }
0x110f   :  { %2485 = vmatprep.subr.mxu0 %v2205_v15 }
0x1110   :  { %2486 = vmatpush3.msra.mxu0 %v2205_v15 }
0x1111   :  { %2487 = vmatprep.subr.mxu0 %v2204_v14 }
0x1112   :  { %2488 = vmatpush3.msra.mxu0 %v2204_v14 }
0x1113   :  { %2489 = vmatprep.subr.mxu0 %v2203_v47 }
0x1114   :  { %2490 = vmatpush3.msra.mxu0 %v2203_v47 }
0x11c5   :  { %v2463_v4 = vpop.f32.mrf.mxu0 }
0x11c6   :  { %v1665_v5 = vadd.f32 %v2463_v4, %v2191_v3 }
0x11c7   :  { %v1659_v6 = vpop.f32.mrf.mxu0 }
0x11c8   :  { %v1660_v7 = vadd.f32 %v2191_v3, %v1659_v6  ;;  %v1669_v8 = vadd.f32 %v1665_v5, %v3025_v57 }
0x11ca   :  { %v1675_v9 = vsel %vm132_vm0, %v1669_v8, 0.0  ;;  %v1668_v10 = vadd.f32 %v1660_v7, %v3023_v56  ;;  %v2199_v56 = vld [vmem:[%s3184_s6 + $0x38] sm:$0xff] }
0x11cb   :  { %1676 = vadd.xlane.f32.xlu1 %v1675_v9  ;;  %2464 = vmatprep.subr.mxu1 %v2199_v56 }
0x11cc   :  { %v1672_v11 = vsel %vm132_vm0, %v1668_v10, 0.0  ;;  %2465 = vmatpush3.msra.mxu1 %v2199_v56  ;;  %v2215_v56 = vld [vmem:[#allocation10 + $0xf] ss:$0 sm:$0xff] }
0x11cd   :  { %1673 = vadd.xlane.f32.xlu0 %v1672_v11  ;;  %2466 = vmatprep.subr.mxu1 %v2198_v23 }
0x11ce   :  { %2467 = vmatpush3.msra.mxu1 %v2198_v23 }
0x11cf   :  { %2468 = vmatprep.subr.mxu1 %v2197_v26 }
0x11d0   :  { %2469 = vmatpush3.msra.mxu1 %v2197_v26 }
0x11d1   :  { %2470 = vmatprep.subr.mxu1 %v2196_v27 }
0x11d2   :  { %2471 = vmatpush3.msra.mxu1 %v2196_v27 }
0x1254   :  { %v1677_v12 = vpop.xlane.xlu1 %1676 }
0x1255   :  { %v1679_v13 = vmul.f32 0.03125, %v1677_v12 }
0x1256   :  { %v1674_v16 = vpop.xlane.xlu0 %1673 }
0x1257   :  { %v1678_v17 = vmul.f32 0.03125, %v1674_v16  ;;  %v1681_v18 = vsub.f32 %v1669_v8, %v1679_v13 }
0x1259   :  { %v1680_v19 = vsub.f32 %v1668_v10, %v1678_v17  ;;  %v1683_v22 = vmul.f32 %v1681_v18, %v1681_v18 }
0x125b   :  { %v1682_v20 = vmul.f32 %v1680_v19, %v1680_v19  ;;  %v1687_v57 = vsel %vm132_vm0, %v1683_v22, 0.0 }
0x125d   :  { %v1684_v21 = vsel %vm132_vm0, %v1682_v20, 0.0 }
0x125e   :  { %1685 = vadd.xlane.f32.xlu0 %v1684_v21  ;;  %v2214_v21 = vld [vmem:[#allocation10 + $0xe] ss:$0 sm:$0xff] }
0x1262   :  { %1688 = vadd.xlane.f32.xlu0 %v1687_v57 }
0x12e7   :  { %v1686_v30 = vpop.xlane.xlu0 %1685 }
0x12e8   :  { %v1690_v31 = vmul.f32 0.03125, %v1686_v30 }
0x12ea   :  { %v1692_v32 = vadd.f32 1e-05, %v1690_v31 }
0x12eb   :  { %v1689_v33 = vpop.xlane.xlu0 %1688 }
0x12ec   :  { %2561 = vrsqrt.f32 %v1692_v32  ;;  %v1691_v34 = vmul.f32 0.03125, %v1689_v33 }
0x12ee   :  { %v1693_v35 = vadd.f32 1e-05, %v1691_v34 }
0x12f0   :  { %2563 = vrsqrt.f32 %v1693_v35 }
0x12f9   :  { %v2562_v36 = vpop.eup %2561 }
0x12fa   :  { %v1696_v38 = vmul.f32 %v2562_v36, %v1680_v19 }
0x12fc   :  { %v1702_v40 = vmul.f32 %v2194_v37, %v1696_v38 }
0x12fd   :  { %v2564_v41 = vpop.eup %2563 }
0x12fe   :  { %v1697_v42 = vmul.f32 %v2564_v41, %v1681_v18  ;;  %v1708_v43 = vadd.f32 %v2195_v39, %v1702_v40  ;;  %v1983_v40 = vld [vmem:[#allocation8 + $0x18] sm:$0xff]  ;;  %v1982_v41 = vld [vmem:[#allocation8 + $0x10] sm:$0xff] }
0x12ff   :  { %2494 = vmatprep.subr.mxu1 %v1983_v40 }
0x1300   :  { %v1703_v44 = vmul.f32 %v2194_v37, %v1697_v42  ;;  %2472 = vmatprep.mubr.msk.f32.mxu1 %vm132_vm0, %v1708_v43  ;;  %v1981_v42 = vld [vmem:[#allocation8 + $0x8] sm:$0xff] }
0x1302   :  { %v1709_v45 = vadd.f32 %v2195_v39, %v1703_v44 }
0x1304   :  { %2473 = vmatmul.mubr.msk.f32.vlgmr.msra.gmra.mxu1 %vm132_vm0, %v1709_v45 }
0x1305   :  { %2495 = vmatpush3.msra.mxu1 %v1983_v40 }
0x1306   :  { %2496 = vmatprep.subr.mxu1 %v1982_v41 }
0x1307   :  { %2497 = vmatpush3.msra.mxu1 %v1982_v41 }
0x1308   :  { %2498 = vmatprep.subr.mxu1 %v1981_v42 }
0x1309   :  { %2499 = vmatpush3.msra.mxu1 %v1981_v42 }
0x13c4   :  { %v2474_v49 = vpop.f32.mrf.mxu1 }
0x13c5   :  { %v1798_v50 = vadd.f32 %v2474_v49, %v2200_v48  ;;  %v2216_v49 = vld [vmem:[#allocation11] ss:$0 sm:$0xff] }
0x13c6   :  { %v1792_v51 = vpop.f32.mrf.mxu1 }
0x13c7   :  { %v1793_v52 = vadd.f32 %v2200_v48, %v1792_v51  ;;  %v1802_v54 = vmax.f32 %v1798_v50, 0.0 }
0x13c9   :  { %v1801_v53 = vmax.f32 %v1793_v52, 0.0 }
0x13cb   :  { %2491 = vmatprep.mubr.msk.f32.mxu0 %vm953_vm2, %v1801_v53 }
0x13cc   :  { %2492 = vmatmul.mubr.msk.f32.vlgmr.msra.gmra.mxu0 %vm953_vm2, %v1802_v54  ;;  %v2217_v54 = vld [vmem:[#allocation11 + $0x1] ss:$0 sm:$0xff] }
0x148c   :  { %v2493_v58 = vpop.f32.mrf.mxu0 }
0x148d   :  { %v1895_v59 = vadd.f32 %v2493_v58, %v2211_v55 }
0x148e   :  { %v1889_v60 = vpop.f32.mrf.mxu0 }
0x148f   :  { %v1890_v61 = vadd.f32 %v2211_v55, %v1889_v60  ;;  %v1899_v62 = vadd.f32 %v1895_v59, %v1709_v45  ;;  %v2073_v60 = vld [vmem:[%s3189_s11 + $0x8] sm:$0xff] }
0x1490   :  { %vm2083_vm3 = vcmp.ne.f32.partialorder %v2073_v60, -100.0 }
0x1491   :  { %v1905_v63 = vsel %vm132_vm0, %v1899_v62, 0.0  ;;  %v1898_v0 = vadd.f32 %v1890_v61, %v1708_v43  ;;  %v1980_v43 = vld [vmem:[#allocation8] sm:$0xff]  ;;  %v2072_v61 = vld [vmem:[%s3189_s11] sm:$0xff] }
0x1492   :  { %1906 = vadd.xlane.f32.xlu0 %v1905_v63  ;;  %2500 = vmatprep.subr.mxu1 %v1980_v43  ;;  %vm2082_vm4 = vcmp.ne.f32.partialorder %v2072_v61, -100.0 }
0x1493   :  { %v1902_v1 = vsel %vm132_vm0, %v1898_v0, 0.0  ;;  %2501 = vmatpush3.msra.mxu1 %v1980_v43 }
0x1494   :  { %1903 = vadd.xlane.f32.xlu1 %v1902_v1  ;;  %v2218_v1 = vld [vmem:[#allocation11 + $0x2] ss:$0 sm:$0xff] }
0x151b   :  { %v1907_v2 = vpop.xlane.xlu0 %1906 }
0x151c   :  { %v1909_v3 = vmul.f32 0.03125, %v1907_v2 }
0x151d   :  { %v1904_v4 = vpop.xlane.xlu1 %1903 }
0x151e   :  { %v1911_v5 = vsub.f32 %v1899_v62, %v1909_v3  ;;  %v1908_v6 = vmul.f32 0.03125, %v1904_v4  ;;  %v2743_v62 = vmov 0.0  }
0x151f   :  { %v2222_v63 = vsel %vm2083_vm3, 1.0, %v2743_v62 }
0x1520   :  { %v1910_v7 = vsub.f32 %v1898_v0, %v1908_v6  ;;  %v1913_v8 = vmul.f32 %v1911_v5, %v1911_v5  ;;  %v2221_v0 = vsel %vm2082_vm4, 1.0, %v2743_v62 }
0x1522   :  { %v1917_v9 = vsel %vm132_vm0, %v1913_v8, 0.0  ;;  %v1912_v10 = vmul.f32 %v1910_v7, %v1910_v7 }
0x1523   :  { %1918 = vadd.xlane.f32.xlu0 %v1917_v9 }
0x1524   :  { %v1914_v11 = vsel %vm132_vm0, %v1912_v10, 0.0 }
0x1525   :  { %1915 = vadd.xlane.f32.xlu1 %v1914_v11 }
0x15ac   :  { %v1919_v12 = vpop.xlane.xlu0 %1918 }
0x15ad   :  { %v1921_v13 = vmul.f32 0.03125, %v1919_v12 }
0x15ae   :  { %v1916_v16 = vpop.xlane.xlu1 %1915 }
0x15af   :  { %v1923_v17 = vadd.f32 1e-05, %v1921_v13  ;;  %v1920_v18 = vmul.f32 0.03125, %v1916_v16 }
0x15b1   :  { %2565 = vrsqrt.f32 %v1923_v17  ;;  %v1922_v19 = vadd.f32 1e-05, %v1920_v18 }
0x15b3   :  { %2567 = vrsqrt.f32 %v1922_v19 }
0x15be   :  { %v2566_v20 = vpop.eup %2565 }
0x15bf   :  { %v1927_v22 = vmul.f32 %v2566_v20, %v1911_v5 }
0x15c0   :  { %v2568_v57 = vpop.eup %2567 }
0x15c1   :  { %v1933_v23 = vmul.f32 %v2214_v21, %v1927_v22  ;;  %v1926_v26 = vmul.f32 %v2568_v57, %v1910_v7 }
0x15c3   :  { %v1939_v27 = vadd.f32 %v2215_v56, %v1933_v23  ;;  %v1932_v24 = vmul.f32 %v2214_v21, %v1926_v26 }
0x15c5   :  { %v1945_v25 = vsel %vm132_vm0, %v1939_v27, 0.0  ;;  %v1938_v28 = vadd.f32 %v2215_v56, %v1932_v24 }
0x15c6   :  { %1946 = vadd.xlane.f32.xlu0 %v1945_v25 }
0x15c7   :  { %v1942_v29 = vsel %vm132_vm0, %v1938_v28, 0.0 }
0x15c8   :  { %1943 = vadd.xlane.f32.xlu1 %v1942_v29 }
0x164f   :  { %v1947_v30 = vpop.xlane.xlu0 %1946 }
0x1650   :  { %v1949_v31 = vmul.f32 0.03125, %v1947_v30 }
0x1651   :  { %v1944_v32 = vpop.xlane.xlu1 %1943 }
0x1652   :  { %v1951_v33 = vsub.f32 %v1939_v27, %v1949_v31  ;;  %v1948_v34 = vmul.f32 0.03125, %v1944_v32 }
0x1654   :  { %v1950_v35 = vsub.f32 %v1938_v28, %v1948_v34  ;;  %v1953_v36 = vmul.f32 %v1951_v33, %v1951_v33 }
0x1656   :  { %v1957_v37 = vsel %vm132_vm0, %v1953_v36, 0.0  ;;  %v1952_v38 = vmul.f32 %v1950_v35, %v1950_v35 }
0x1657   :  { %1958 = vadd.xlane.f32.xlu0 %v1957_v37 }
0x1658   :  { %v1954_v39 = vsel %vm132_vm0, %v1952_v38, 0.0 }
0x1659   :  { %1955 = vadd.xlane.f32.xlu1 %v1954_v39 }
0x165b   :  { %2103 = vadd.xlane.f32.xlu0 %v2222_v63 }
0x165d   :  { %2101 = vadd.xlane.f32.xlu1 %v2221_v0 }
0x16e0   :  { %v1959_v44 = vpop.xlane.xlu0 %1958 }
0x16e1   :  { %v1961_v45 = vmul.f32 0.03125, %v1959_v44 }
0x16e2   :  { %v1956_v46 = vpop.xlane.xlu1 %1955 }
0x16e3   :  { %v1963_v15 = vadd.f32 1e-05, %v1961_v45  ;;  %v1960_v14 = vmul.f32 0.03125, %v1956_v46 }
0x16e4   :  { %v2104_v18 = vpop.xlane.xlu0 %2103 }
0x16e5   :  { %2569 = vrsqrt.f32 %v1963_v15  ;;  %v1962_v47 = vadd.f32 1e-05, %v1960_v14 }
0x16e6   :  { %v2102_v19 = vpop.xlane.xlu1 %2101 }
0x16e7   :  { %2571 = vrsqrt.f32 %v1962_v47  ;;  %v2105_v20 = vadd.f32 %v2104_v18, %v2102_v19 }
0x16e9   :  { %v2106_v21 = vrot.slane %v2105_v20, 4 }
0x16eb   :  { %v2107_v22 = vadd.f32 %v2106_v21, %v2105_v20 }
0x16ed   :  { %v2108_v57 = vrot.slane %v2107_v22, 2 }
0x16ef   :  { %v2109_v56 = vadd.f32 %v2108_v57, %v2107_v22 }
0x16f1   :  { %v2110_v23 = vrot.slane %v2109_v56, 1 }
0x16f2   :  { %v2570_v48 = vpop.eup %2569 }
0x16f3   :  { %v1967_v50 = vmul.f32 %v2570_v48, %v1951_v33  ;;  %v2111_v26 = vadd.f32 %v2110_v23, %v2109_v56 }
0x16f4   :  { %v2572_v51 = vpop.eup %2571 }
0x16f5   :  { %v1966_v52 = vmul.f32 %v2572_v51, %v1950_v35  ;;  %v1973_v53 = vmul.f32 %v2216_v49, %v1967_v50 }
0x16f7   :  { %v1972_v55 = vmul.f32 %v2216_v49, %v1966_v52  ;;  %v1979_v59 = vadd.f32 %v2217_v54, %v1973_v53 }
0x16f9   :  { %v1978_v58 = vadd.f32 %v2217_v54, %v1972_v55 }
0x16fb   :  { %2502 = vmatprep.mubr.msk.f32.mxu1 %vm132_vm0, %v1978_v58 }
0x16fc   :  { %2503 = vmatmul.mubr.msk.f32.vlgmr.msra.gmra.mxu1 %vm132_vm0, %v1979_v59 }
0x17bc   :  { %v2504_v2 = vpop.f32.mrf.mxu1 }
0x17bd   :  { %v2067_v3 = vadd.f32 %v2504_v2, %v2218_v1 }
0x17be   :  { %v2061_v4 = vpop.f32.mrf.mxu1 }
0x17bf   :  { %2071 = vst [vmem:[%s3190_s12 + $0x8] sm:$0xff] %v2067_v3  ;;  %v2076_v5 = vmul.f32 1.442695, %v2067_v3  ;;  %v2062_v6 = vadd.f32 %v2218_v1, %v2061_v4  ;;  %v2079_v8 = vmul.f32 %v2073_v60, %v2067_v3 }
0x17c1   :  { %2573 = vpow2.f32 %v2076_v5  ;;  %2070 = vst [vmem:[%s3190_s12] sm:$0xff] %v2062_v6  ;;  %v2074_v7 = vmul.f32 1.442695, %v2062_v6  ;;  %v2078_v10 = vmul.f32 %v2072_v61, %v2062_v6  ;;  %s2744_s12 = smov [#allocation13]  }
0x17c2   :  { %s2124_s10 = sshll.u32 %s2744_s12, 4  ;;  %s2125_s10 = int_to_ptr.vmem [resolvable:$true] %s2124_s10 }
0x17c3   :  { %2575 = vpow2.f32 %v2074_v7  ;;  %s2699_s23 = scalar_lea.vmem %s2125_s10, 16  ;;  %s2703_s1 = scalar_lea.vmem %s2125_s10, 32 }
0x17c4   :  { %2577 = vrcp.f32 %v2111_v26  ;;  %p2700_p2 = scmp.ne.s32.totalorder %s2125_s10, %s2699_s23  ;;  %p2704_p3 = scmp.lt.s32.totalorder %s2125_s10, %s2125_s10 }
0x17c5   :  { %p2705_p4 = scmp.lt.s32.totalorder %s2703_s1, %s2699_s23 }
0x17c7   :  { %p2706_p5 = por %p2705_p4, %p2704_p3 }
0x17c9   :  { %p2707_p6 = pnand %p2706_p5, %p2700_p2 }
0x17ce   :  { %v2574_v9 = vpop.eup %2573 }
0x17cf   :  { %v2081_v11 = vsub.f32 %v2574_v9, %v2079_v8 }
0x17d0   :  { %v2576_v12 = vpop.eup %2575 }
0x17d1   :  { %v2085_v13 = vsel %vm2083_vm3, %v2081_v11, 0.0  ;;  %v2080_v16 = vsub.f32 %v2576_v12, %v2078_v10  ;;  %v2578_v34 = vpop.eup %2577 }
0x17d2   :  { %2088 = vadd.xlane.f32.xlu0 %v2085_v13 }
0x17d3   :  { %v2084_v17 = vsel %vm2082_vm4, %v2080_v16, 0.0 }
0x17d4   :  { %2086 = vadd.xlane.f32.xlu1 %v2084_v17 }
0x185b   :  { %v2089_v27 = vpop.xlane.xlu0 %2088 }
0x185d   :  { %v2087_v24 = vpop.xlane.xlu1 %2086 }
0x185e   :  { %v2090_v25 = vadd.f32 %v2089_v27, %v2087_v24 }
0x1860   :  { %v2091_v28 = vrot.slane %v2090_v25, 4 }
0x1862   :  { %v2092_v29 = vadd.f32 %v2091_v28, %v2090_v25 }
0x1864   :  { %v2093_v30 = vrot.slane %v2092_v29, 2 }
0x1866   :  { %v2094_v31 = vadd.f32 %v2093_v30, %v2092_v29 }
0x1868   :  { %v2095_v32 = vrot.slane %v2094_v31, 1 }
0x186a   :  { %v2096_v33 = vadd.f32 %v2095_v32, %v2094_v31 }
0x186c   :  { %v2113_v35 = vmul.f32 %v2578_v34, %v2096_v33 }
0x186e   :  { %2115 = vst.msk [vmem:[#allocation13] sm:$0x1] %vm2114_vm5, %v2113_v35 }
0x186f   :  { %2710 = shalt.err (!%p2707_p6)
}
0x1870   :  { %2127 = dma.vmem_to_hbm [thread:$0]  %s2125_s10, 16, %s3191_s13, [#allocation4]  }
0x1871   :  { %2727 = dma.done.wait [#allocation4], 16  }
0x1872   :  { %2728 = vsyncadd [#allocation4], 4294967280 }
0x1873   :  { %2133 = vsyncpa [#allocation3], 1 }
0x1874   :  { %2134 = vsyncpa [#allocation6], 1 }
0x1875   :  { %2135 = vsyncpa [#allocation9], 1 }
0x1876   :  { %2136 = vsyncpa [#allocation12], 1 }
0x1877   :  { %2137 = vsyncpa [#allocation4], 1 }

</bundles_post_ra>
